<compile_context>
chip_gen: v5e
topology: v5e:2x2
jax: 0.10.0
libtpu: 0.0.40
codegen_flags: <defaults>
</compile_context>

<pallas_src>
import jax
import jax.numpy as jnp
from jax.experimental import pallas as pl
from jax.experimental.pallas import tpu as pltpu

jax.config.update("jax_default_matmul_precision", "highest")

HIDDEN_SIZE = 32
OUTPUT_SIZE = 16
PACK = 4 * HIDDEN_SIZE          # 128: packed gate width == padded logit width (lane-dense)
NEG_INF = -1e30                 # finite "-inf" for padded logits (avoids inf-arith NaNs)
GROUP = 8                       # rows per projection/store group (sublane count)
MAX_T_BLK = 64                  # steps per grid chunk (multiple of GROUP)


def _make_kernel(T, t_blk):
    """Build the fused decode kernel for a sequence of (static) length T,
    processed in chunks of t_blk steps (t_blk % 8 == 0)."""
    H = HIDDEN_SIZE
    n_groups = t_blk // GROUP
    need_mask = (T % t_blk) != 0          # only the padded tail needs masking

    def kernel(
        tokens_ref,    # SMEM [T_pad]      scalar-prefetched token ids
        h0_ref,        # VMEM [1, H]       initial hidden state
        gi_tab_ref,    # VMEM [O, 1, 4H]   precomputed input-path gate table (resident)
        w_gh_ref,      # VMEM [H, 4H]      packed hidden->gate weights [Whr|Whz|0|Whn] (resident)
        w_out_ref,     # VMEM [H, 4H]      output projection, cols 0:O real, rest 0 (resident)
        b_out_ref,     # VMEM [1, 4H]      output bias, lanes 0:O real, rest -1e30 (resident)
        logp_ref,      # out  [t_blk, 4H]  per-step log-softmax (lanes 0:O valid)
        h_out_ref,     # out  [1, H]       running / final hidden state (resident carry)
    ):
        c = pl.program_id(0)

        # Initialize the resident hidden-state carry on the global first chunk.
        @pl.when(c == 0)
        def _():
            h_out_ref[...] = h0_ref[...]

        # Hoist resident weights into vregs once per chunk.
        w_gh = w_gh_ref[...]            # [H, 4H]
        w_out = w_out_ref[...]          # [H, 4H]
        b_out = b_out_ref[...]          # [1, 4H]

        h = h_out_ref[...]              # [1, H] carry
        base = c * t_blk                # global step offset of this chunk

        for g in range(n_groups):
            rows = []
            for s in range(GROUP):
                i = g * GROUP + s
                tok = tokens_ref[base + i]            # SMEM scalar read
                gi = gi_tab_ref[tok]                  # [1, 4H] dynamic leading-dim read

                # Single MXU push on the serial path.
                gg = gi + jnp.dot(h, w_gh, preferred_element_type=jnp.float32)

                rz = jax.nn.sigmoid(gg[:, 0:2 * H])   # one sigmoid for r and z
                r = rz[:, 0:H]
                z = rz[:, H:2 * H]
                n = jnp.tanh(gg[:, 2 * H:3 * H] + r * gg[:, 3 * H:4 * H])
                h_new = (1.0 - z) * n + z * h
                rows.append(h_new)

                if need_mask:
                    h = jnp.where(base + i < T, h_new, h)   # freeze past real end
                else:
                    h = h_new

            # Batched projection + log_softmax for the 8-row group,
            # stored as one full lane-dense [8, 128] block.
            h8 = jnp.concatenate(rows, axis=0)                         # [8, H]
            logits = (jnp.dot(h8, w_out, preferred_element_type=jnp.float32)
                      + b_out)                                         # [8, 4H]
            m = jnp.max(logits, axis=1, keepdims=True)
            shifted = logits - m
            lse = jnp.log(jnp.sum(jnp.exp(shifted), axis=1, keepdims=True))
            logp_ref[g * GROUP:(g + 1) * GROUP, :] = shifted - lse     # static store

        h_out_ref[...] = h              # carry to next chunk / final writeback

    return kernel


def prepare_params(params):
    """One-time packing of PyTorch-layout GRUDecoder weights into kernel layout."""
    H, O, P = HIDDEN_SIZE, OUTPUT_SIZE, PACK
    f32 = jnp.float32
    w_ih = params["w_ih"].astype(f32)         # [3H, H], rows ordered (r, z, n)
    w_hh = params["w_hh"].astype(f32)         # [3H, H]
    b_ih = params["b_ih"].astype(f32)         # [3H]
    b_hh = params["b_hh"].astype(f32)         # [3H]

    # Entire input path (embedding -> ReLU -> input-gate matmul + biases) as a
    # per-token lookup table.  b_hn lives in lanes 3H:4H so the per-step hidden
    # dot needs no separate bias add.
    x_tab = jnp.maximum(params["embedding"].astype(f32), 0.0)          # [O, H]
    gi_r = x_tab @ w_ih[0:H].T + b_ih[0:H] + b_hh[0:H]                 # [O, H]
    gi_z = x_tab @ w_ih[H:2 * H].T + b_ih[H:2 * H] + b_hh[H:2 * H]     # [O, H]
    gi_n = x_tab @ w_ih[2 * H:3 * H].T + b_ih[2 * H:3 * H]             # [O, H]
    gh_nb = jnp.broadcast_to(b_hh[2 * H:3 * H], (O, H))                # [O, H]
    gi_table = jnp.concatenate([gi_r, gi_z, gi_n, gh_nb], axis=1)      # [O, 4H]
    gi_table = gi_table.reshape(O, 1, P)                               # leading-dim indexable

    zH = jnp.zeros((H, H), f32)
    w_gh = jnp.concatenate(                   # [H, 4H]: [W_hr^T | W_hz^T | 0 | W_hn^T]
        [w_hh[0:H].T, w_hh[H:2 * H].T, zH, w_hh[2 * H:3 * H].T], axis=1)

    w_out_pad = jnp.zeros((H, P), f32).at[:, :O].set(params["w_out"].astype(f32).T)
    b_out_pad = jnp.full((1, P), NEG_INF, f32).at[0, :O].set(params["b_out"].astype(f32))

    return {"gi_table": gi_table, "w_gh": w_gh,
            "w_out_pad": w_out_pad, "b_out_pad": b_out_pad}


@jax.jit
def gru_decoder_decode(tokens, hidden, prep):
    """Run T fused decode steps (teacher-forced token sequence).

    tokens: int32 [T]; hidden: [1, 1, H].
    Returns (logp [T, O], hidden [1, 1, H])."""
    T = tokens.shape[0]
    H, O, P = HIDDEN_SIZE, OUTPUT_SIZE, PACK

    t_blk = min(((T + GROUP - 1) // GROUP) * GROUP, MAX_T_BLK)
    n_chunks = (T + t_blk - 1) // t_blk
    T_pad = n_chunks * t_blk

    tokens_p = jnp.zeros((T_pad,), jnp.int32).at[:T].set(tokens.astype(jnp.int32))
    h0 = hidden.reshape(1, H).astype(jnp.float32)

    kernel = _make_kernel(T, t_blk)

    grid_spec = pltpu.PrefetchScalarGridSpec(
        num_scalar_prefetch=1,
        grid=(n_chunks,),
        in_specs=[
            pl.BlockSpec((1, H), lambda c, toks: (0, 0)),          # h0
            pl.BlockSpec((O, 1, P), lambda c, toks: (0, 0, 0)),    # gi_table (resident)
            pl.BlockSpec((H, P), lambda c, toks: (0, 0)),          # w_gh     (resident)
            pl.BlockSpec((H, P), lambda c, toks: (0, 0)),          # w_out    (resident)
            pl.BlockSpec((1, P), lambda c, toks: (0, 0)),          # b_out    (resident)
        ],
        out_specs=(
            pl.BlockSpec((t_blk, P), lambda c, toks: (c, 0)),      # logp chunk (lane-dense)
            pl.BlockSpec((1, H), lambda c, toks: (0, 0)),          # hidden carry / final
        ),
    )

    logp_pad, h_fin = pl.pallas_call(
        kernel,
        grid_spec=grid_spec,
        out_shape=(
            jax.ShapeDtypeStruct((T_pad, P), jnp.float32),
            jax.ShapeDtypeStruct((1, H), jnp.float32),
        ),
        compiler_params=pltpu.CompilerParams(dimension_semantics=("arbitrary",)),
    )(tokens_p, h0, prep["gi_table"], prep["w_gh"], prep["w_out_pad"], prep["b_out_pad"])

    logp = logp_pad[:T, :O]                    # [T, O]
    return logp, h_fin.reshape(1, 1, H)


def gru_decoder_forward(token, hidden, prep):
    """Single-step forward matching the PyTorch module: returns (logp [1,O], hidden [1,1,H])."""
    tokens = jnp.asarray(token, jnp.int32).reshape(1)
    logp, h_new = gru_decoder_decode(tokens, hidden, prep)
    return logp, h_new


# ---------------------------------------------------------------------------
# Parameter init + pure-JAX reference (PyTorch semantics)
# ---------------------------------------------------------------------------

def init_params(key):
    H, O = HIDDEN_SIZE, OUTPUT_SIZE
    ks = jax.random.split(key, 7)
    scale = 0.1
    return {
        "embedding": scale * jax.random.normal(ks[0], (O, H), jnp.float32),
        "w_ih": scale * jax.random.normal(ks[1], (3 * H, H), jnp.float32),
        "w_hh": scale * jax.random.normal(ks[2], (3 * H, H), jnp.float32),
        "b_ih": scale * jax.random.normal(ks[3], (3 * H,), jnp.float32),
        "b_hh": scale * jax.random.normal(ks[4], (3 * H,), jnp.float32),
        "w_out": scale * jax.random.normal(ks[5], (O, H), jnp.float32),
        "b_out": scale * jax.random.normal(ks[6], (O,), jnp.float32),
    }


@jax.jit
def reference_forward(token, hidden, params):
    """Pure-JAX reference matching the PyTorch forward exactly (one step)."""
    H = HIDDEN_SIZE
    x = jnp.maximum(params["embedding"][token].reshape(1, H), 0.0)
    h = hidden.reshape(1, H)
    gi = x @ params["w_ih"].T + params["b_ih"]
    gh = h @ params["w_hh"].T + params["b_hh"]
    r = jax.nn.sigmoid(gi[:, :H] + gh[:, :H])
    z = jax.nn.sigmoid(gi[:, H:2 * H] + gh[:, H:2 * H])
    n = jnp.tanh(gi[:, 2 * H:] + r * gh[:, 2 * H:])
    h_new = (1.0 - z) * n + z * h
    logits = h_new @ params["w_out"].T + params["b_out"]
    logp = jax.nn.log_softmax(logits, axis=1)
    return logp, h_new.reshape(1, 1, H)


def reference_decode(tokens, hidden, params):
    logps, h = [], hidden
    for t in range(tokens.shape[0]):
        lp, h = reference_forward(tokens[t], h, params)
        logps.append(lp)
    return jnp.concatenate(logps, axis=0), h


if __name__ == "__main__":
    key = jax.random.PRNGKey(0)
    pkey, hkey, tkey = jax.random.split(key, 3)
    params = init_params(pkey)
    prep = prepare_params(params)              # one-time weight packing / gate-table precompute

    hidden0 = 0.1 * jax.random.normal(hkey, (1, 1, HIDDEN_SIZE), jnp.float32)

    # --- single-step forward (module semantics; exercises pad-step masking) ---
    token = jnp.array(3, dtype=jnp.int32)
    logp, h_new = gru_decoder_forward(token, hidden0, prep)
    logp, h_new = jax.block_until_ready(logp), jax.block_until_ready(h_new)
    ref_logp, ref_h = reference_forward(token, hidden0, params)
    assert logp.shape == (1, OUTPUT_SIZE)
    assert h_new.shape == (1, 1, HIDDEN_SIZE)
    assert jnp.allclose(logp, ref_logp, atol=2e-4), "single-step log-softmax mismatch"
    assert jnp.allclose(h_new, ref_h, atol=2e-4), "single-step hidden mismatch"

    # --- fused multi-step decode, single chunk (time loop inside the kernel) ---
    tokens = jnp.array([3, 7, 1, 12, 5, 0, 9, 14], dtype=jnp.int32)   # T = 8
    logp_seq, h_seq = gru_decoder_decode(tokens, hidden0, prep)
    logp_seq, h_seq = jax.block_until_ready(logp_seq), jax.block_until_ready(h_seq)
    ref_logp_seq, ref_h_seq = reference_decode(tokens, hidden0, params)
    assert logp_seq.shape == (tokens.shape[0], OUTPUT_SIZE)
    assert h_seq.shape == (1, 1, HIDDEN_SIZE)
    assert jnp.allclose(logp_seq, ref_logp_seq, atol=2e-4), "multi-step log-softmax mismatch"
    assert jnp.allclose(h_seq, ref_h_seq, atol=2e-4), "multi-step hidden mismatch"

    # --- long decode: multiple chunks + padded tail (chunked carry + masking) ---
    tokens_long = jax.random.randint(tkey, (70,), 0, OUTPUT_SIZE, dtype=jnp.int32)
    logp_long, h_long = gru_decoder_decode(tokens_long, hidden0, prep)
    logp_long, h_long = jax.block_until_ready(logp_long), jax.block_until_ready(h_long)
    ref_logp_long, ref_h_long = reference_decode(tokens_long, hidden0, params)
    assert logp_long.shape == (70, OUTPUT_SIZE)
    assert jnp.allclose(logp_long, ref_logp_long, atol=3e-4), "long-decode log-softmax mismatch"
    assert jnp.allclose(h_long, ref_h_long, atol=3e-4), "long-decode hidden mismatch"

    print("KERNEL_OK")
</pallas_src>

<mosaic_0001>
module attributes {stable_mosaic.version = 11 : i64} {
  func.func @kernel(%arg0: i32, %arg1: memref<8xi32, #tpu.memory_space<smem>>, %arg2: memref<1x32xf32, #tpu.memory_space<vmem>>, %arg3: memref<16x1x128xf32, #tpu.memory_space<vmem>>, %arg4: memref<32x128xf32, #tpu.memory_space<vmem>>, %arg5: memref<32x128xf32, #tpu.memory_space<vmem>>, %arg6: memref<1x128xf32, #tpu.memory_space<vmem>>, %arg7: memref<8x128xf32, #tpu.memory_space<vmem>>, %arg8: memref<1x32xf32, #tpu.memory_space<vmem>>) attributes {dimension_semantics = [#tpu.dimension_semantics<arbitrary>], iteration_bounds = array<i64: 1>, scalar_prefetch = 1 : i64, scratch_operands = 0 : i64, tpu.core_type = #tpu.core_type<tc>, window_params = [{pipeline_mode = #tpu.pipeline_mode<synchronous>, transform_indices = @transform_0, window_bounds = array<i64: 1, 32>}, {pipeline_mode = #tpu.pipeline_mode<synchronous>, transform_indices = @transform_1, window_bounds = array<i64: 16, 1, 128>}, {pipeline_mode = #tpu.pipeline_mode<synchronous>, transform_indices = @transform_2, window_bounds = array<i64: 32, 128>}, {pipeline_mode = #tpu.pipeline_mode<synchronous>, transform_indices = @transform_3, window_bounds = array<i64: 32, 128>}, {pipeline_mode = #tpu.pipeline_mode<synchronous>, transform_indices = @transform_4, window_bounds = array<i64: 1, 128>}, {transform_indices = @transform_5, window_bounds = array<i64: 8, 128>}, {pipeline_mode = #tpu.pipeline_mode<synchronous>, transform_indices = @transform_6, window_bounds = array<i64: 1, 32>}]} {
    %c0_i32 = arith.constant 0 : i32
    %0 = arith.cmpi eq, %arg0, %c0_i32 : i32
    %1 = arith.extui %0 : i1 to i32
    %c0_i32_0 = arith.constant 0 : i32
    %2 = arith.cmpi ne, %1, %c0_i32_0 : i32
    scf.if %2 {
      %c0_71 = arith.constant 0 : index
      %c0_72 = arith.constant 0 : index
      %256 = vector.load %arg2[%c0_71, %c0_72] : memref<1x32xf32, #tpu.memory_space<vmem>>, vector<1x32xf32>
      %c0_73 = arith.constant 0 : index
      %c0_74 = arith.constant 0 : index
      %257 = vector.load %arg8[%c0_73, %c0_74] : memref<1x32xf32, #tpu.memory_space<vmem>>, vector<1x32xf32>
      tpu.vector_store %arg8[%c0_73, %c0_74], %256 {strides = array<i32>} : memref<1x32xf32, #tpu.memory_space<vmem>>, vector<1x32xf32>,
    } else {
    }
    %c0 = arith.constant 0 : index
    %c0_1 = arith.constant 0 : index
    %3 = vector.load %arg4[%c0, %c0_1] : memref<32x128xf32, #tpu.memory_space<vmem>>, vector<32x128xf32>
    %c0_2 = arith.constant 0 : index
    %c0_3 = arith.constant 0 : index
    %4 = vector.load %arg5[%c0_2, %c0_3] : memref<32x128xf32, #tpu.memory_space<vmem>>, vector<32x128xf32>
    %c0_4 = arith.constant 0 : index
    %c0_5 = arith.constant 0 : index
    %5 = vector.load %arg6[%c0_4, %c0_5] : memref<1x128xf32, #tpu.memory_space<vmem>>, vector<1x128xf32>
    %c0_6 = arith.constant 0 : index
    %c0_7 = arith.constant 0 : index
    %6 = vector.load %arg8[%c0_6, %c0_7] : memref<1x32xf32, #tpu.memory_space<vmem>>, vector<1x32xf32>
    %c8_i32 = arith.constant 8 : i32
    %7 = arith.muli %arg0, %c8_i32 : i32
    %c0_i32_8 = arith.constant 0 : i32
    %8 = arith.addi %7, %c0_i32_8 : i32
    %9 = arith.index_cast %8 : i32 to index
    %10 = memref.load %arg1[%9] : memref<8xi32, #tpu.memory_space<smem>>
    %11 = arith.index_cast %10 : i32 to index
    %c0_9 = arith.constant 0 : index
    %c0_10 = arith.constant 0 : index
    %12 = vector.load %arg3[%11, %c0_9, %c0_10] : memref<16x1x128xf32, #tpu.memory_space<vmem>>, vector<1x1x128xf32>
    %13 = vector.shape_cast %12 : vector<1x1x128xf32> to vector<1x128xf32>
    %cst = arith.constant dense<0.000000e+00> : vector<1x128xf32>
    %14 = tpu.matmul %6, %3, %cst {dimension_numbers = #tpu.dot_dimension_numbers<[1], [0], [0], [1], [0, 0, 1, 1], [], []>, precision = #tpu.contract_precision<fp32>} : vector<1x32xf32>, vector<32x128xf32>, vector<1x128xf32> -> vector<1x128xf32>
    %15 = arith.addf %13, %14 : vector<1x128xf32>
    %16 = vector.extract_strided_slice %15 {offsets = [0, 0], sizes = [1, 64], strides = [1, 1]} : vector<1x128xf32> to vector<1x64xf32>
    %17 = arith.negf %16 : vector<1x64xf32>
    %18 = math.exp %17 : vector<1x64xf32>
    %cst_11 = arith.constant 1.000000e+00 : f32
    %19 = vector.broadcast %cst_11 : f32 to vector<1x64xf32>
    %20 = arith.addf %19, %18 : vector<1x64xf32>
    %21 = arith.divf %19, %20 : vector<1x64xf32>
    %22 = vector.extract_strided_slice %21 {offsets = [0, 0], sizes = [1, 32], strides = [1, 1]} : vector<1x64xf32> to vector<1x32xf32>
    %23 = vector.extract_strided_slice %21 {offsets = [0, 32], sizes = [1, 32], strides = [1, 1]} : vector<1x64xf32> to vector<1x32xf32>
    %24 = vector.extract_strided_slice %15 {offsets = [0, 64], sizes = [1, 32], strides = [1, 1]} : vector<1x128xf32> to vector<1x32xf32>
    %25 = vector.extract_strided_slice %15 {offsets = [0, 96], sizes = [1, 32], strides = [1, 1]} : vector<1x128xf32> to vector<1x32xf32>
    %26 = arith.mulf %22, %25 : vector<1x32xf32>
    %27 = arith.addf %24, %26 : vector<1x32xf32>
    %28 = math.tanh %27 : vector<1x32xf32>
    %cst_12 = arith.constant 1.000000e+00 : f32
    %29 = vector.broadcast %cst_12 : f32 to vector<1x32xf32>
    %30 = arith.subf %29, %23 : vector<1x32xf32>
    %31 = arith.mulf %30, %28 : vector<1x32xf32>
    %32 = arith.mulf %23, %6 : vector<1x32xf32>
    %33 = arith.addf %31, %32 : vector<1x32xf32>
    %c0_i32_13 = arith.constant 0 : i32
    %34 = arith.addi %7, %c0_i32_13 : i32
    %c1_i32 = arith.constant 1 : i32
    %35 = arith.cmpi slt, %34, %c1_i32 : i32
    %36 = arith.select %35, %33, %6 : vector<1x32xf32>
    %c1_i32_14 = arith.constant 1 : i32
    %37 = arith.addi %7, %c1_i32_14 : i32
    %38 = arith.index_cast %37 : i32 to index
    %39 = memref.load %arg1[%38] : memref<8xi32, #tpu.memory_space<smem>>
    %40 = arith.index_cast %39 : i32 to index
    %c0_15 = arith.constant 0 : index
    %c0_16 = arith.constant 0 : index
    %41 = vector.load %arg3[%40, %c0_15, %c0_16] : memref<16x1x128xf32, #tpu.memory_space<vmem>>, vector<1x1x128xf32>
    %42 = vector.shape_cast %41 : vector<1x1x128xf32> to vector<1x128xf32>
    %cst_17 = arith.constant dense<0.000000e+00> : vector<1x128xf32>
    %43 = tpu.matmul %36, %3, %cst_17 {dimension_numbers = #tpu.dot_dimension_numbers<[1], [0], [0], [1], [0, 0, 1, 1], [], []>, precision = #tpu.contract_precision<fp32>} : vector<1x32xf32>, vector<32x128xf32>, vector<1x128xf32> -> vector<1x128xf32>
    %44 = arith.addf %42, %43 : vector<1x128xf32>
    %45 = vector.extract_strided_slice %44 {offsets = [0, 0], sizes = [1, 64], strides = [1, 1]} : vector<1x128xf32> to vector<1x64xf32>
    %46 = arith.negf %45 : vector<1x64xf32>
    %47 = math.exp %46 : vector<1x64xf32>
    %cst_18 = arith.constant 1.000000e+00 : f32
    %48 = vector.broadcast %cst_18 : f32 to vector<1x64xf32>
    %49 = arith.addf %48, %47 : vector<1x64xf32>
    %50 = arith.divf %48, %49 : vector<1x64xf32>
    %51 = vector.extract_strided_slice %50 {offsets = [0, 0], sizes = [1, 32], strides = [1, 1]} : vector<1x64xf32> to vector<1x32xf32>
    %52 = vector.extract_strided_slice %50 {offsets = [0, 32], sizes = [1, 32], strides = [1, 1]} : vector<1x64xf32> to vector<1x32xf32>
    %53 = vector.extract_strided_slice %44 {offsets = [0, 64], sizes = [1, 32], strides = [1, 1]} : vector<1x128xf32> to vector<1x32xf32>
    %54 = vector.extract_strided_slice %44 {offsets = [0, 96], sizes = [1, 32], strides = [1, 1]} : vector<1x128xf32> to vector<1x32xf32>
    %55 = arith.mulf %51, %54 : vector<1x32xf32>
    %56 = arith.addf %53, %55 : vector<1x32xf32>
    %57 = math.tanh %56 : vector<1x32xf32>
    %cst_19 = arith.constant 1.000000e+00 : f32
    %58 = vector.broadcast %cst_19 : f32 to vector<1x32xf32>
    %59 = arith.subf %58, %52 : vector<1x32xf32>
    %60 = arith.mulf %59, %57 : vector<1x32xf32>
    %61 = arith.mulf %52, %36 : vector<1x32xf32>
    %62 = arith.addf %60, %61 : vector<1x32xf32>
    %c1_i32_20 = arith.constant 1 : i32
    %63 = arith.addi %7, %c1_i32_20 : i32
    %c1_i32_21 = arith.constant 1 : i32
    %64 = arith.cmpi slt, %63, %c1_i32_21 : i32
    %65 = arith.select %64, %62, %36 : vector<1x32xf32>
    %c2_i32 = arith.constant 2 : i32
    %66 = arith.addi %7, %c2_i32 : i32
    %67 = arith.index_cast %66 : i32 to index
    %68 = memref.load %arg1[%67] : memref<8xi32, #tpu.memory_space<smem>>
    %69 = arith.index_cast %68 : i32 to index
    %c0_22 = arith.constant 0 : index
    %c0_23 = arith.constant 0 : index
    %70 = vector.load %arg3[%69, %c0_22, %c0_23] : memref<16x1x128xf32, #tpu.memory_space<vmem>>, vector<1x1x128xf32>
    %71 = vector.shape_cast %70 : vector<1x1x128xf32> to vector<1x128xf32>
    %cst_24 = arith.constant dense<0.000000e+00> : vector<1x128xf32>
    %72 = tpu.matmul %65, %3, %cst_24 {dimension_numbers = #tpu.dot_dimension_numbers<[1], [0], [0], [1], [0, 0, 1, 1], [], []>, precision = #tpu.contract_precision<fp32>} : vector<1x32xf32>, vector<32x128xf32>, vector<1x128xf32> -> vector<1x128xf32>
    %73 = arith.addf %71, %72 : vector<1x128xf32>
    %74 = vector.extract_strided_slice %73 {offsets = [0, 0], sizes = [1, 64], strides = [1, 1]} : vector<1x128xf32> to vector<1x64xf32>
    %75 = arith.negf %74 : vector<1x64xf32>
    %76 = math.exp %75 : vector<1x64xf32>
    %cst_25 = arith.constant 1.000000e+00 : f32
    %77 = vector.broadcast %cst_25 : f32 to vector<1x64xf32>
    %78 = arith.addf %77, %76 : vector<1x64xf32>
    %79 = arith.divf %77, %78 : vector<1x64xf32>
    %80 = vector.extract_strided_slice %79 {offsets = [0, 0], sizes = [1, 32], strides = [1, 1]} : vector<1x64xf32> to vector<1x32xf32>
    %81 = vector.extract_strided_slice %79 {offsets = [0, 32], sizes = [1, 32], strides = [1, 1]} : vector<1x64xf32> to vector<1x32xf32>
    %82 = vector.extract_strided_slice %73 {offsets = [0, 64], sizes = [1, 32], strides = [1, 1]} : vector<1x128xf32> to vector<1x32xf32>
    %83 = vector.extract_strided_slice %73 {offsets = [0, 96], sizes = [1, 32], strides = [1, 1]} : vector<1x128xf32> to vector<1x32xf32>
    %84 = arith.mulf %80, %83 : vector<1x32xf32>
    %85 = arith.addf %82, %84 : vector<1x32xf32>
    %86 = math.tanh %85 : vector<1x32xf32>
    %cst_26 = arith.constant 1.000000e+00 : f32
    %87 = vector.broadcast %cst_26 : f32 to vector<1x32xf32>
    %88 = arith.subf %87, %81 : vector<1x32xf32>
    %89 = arith.mulf %88, %86 : vector<1x32xf32>
    %90 = arith.mulf %81, %65 : vector<1x32xf32>
    %91 = arith.addf %89, %90 : vector<1x32xf32>
    %c2_i32_27 = arith.constant 2 : i32
    %92 = arith.addi %7, %c2_i32_27 : i32
    %c1_i32_28 = arith.constant 1 : i32
    %93 = arith.cmpi slt, %92, %c1_i32_28 : i32
    %94 = arith.select %93, %91, %65 : vector<1x32xf32>
    %c3_i32 = arith.constant 3 : i32
    %95 = arith.addi %7, %c3_i32 : i32
    %96 = arith.index_cast %95 : i32 to index
    %97 = memref.load %arg1[%96] : memref<8xi32, #tpu.memory_space<smem>>
    %98 = arith.index_cast %97 : i32 to index
    %c0_29 = arith.constant 0 : index
    %c0_30 = arith.constant 0 : index
    %99 = vector.load %arg3[%98, %c0_29, %c0_30] : memref<16x1x128xf32, #tpu.memory_space<vmem>>, vector<1x1x128xf32>
    %100 = vector.shape_cast %99 : vector<1x1x128xf32> to vector<1x128xf32>
    %cst_31 = arith.constant dense<0.000000e+00> : vector<1x128xf32>
    %101 = tpu.matmul %94, %3, %cst_31 {dimension_numbers = #tpu.dot_dimension_numbers<[1], [0], [0], [1], [0, 0, 1, 1], [], []>, precision = #tpu.contract_precision<fp32>} : vector<1x32xf32>, vector<32x128xf32>, vector<1x128xf32> -> vector<1x128xf32>
    %102 = arith.addf %100, %101 : vector<1x128xf32>
    %103 = vector.extract_strided_slice %102 {offsets = [0, 0], sizes = [1, 64], strides = [1, 1]} : vector<1x128xf32> to vector<1x64xf32>
    %104 = arith.negf %103 : vector<1x64xf32>
    %105 = math.exp %104 : vector<1x64xf32>
    %cst_32 = arith.constant 1.000000e+00 : f32
    %106 = vector.broadcast %cst_32 : f32 to vector<1x64xf32>
    %107 = arith.addf %106, %105 : vector<1x64xf32>
    %108 = arith.divf %106, %107 : vector<1x64xf32>
    %109 = vector.extract_strided_slice %108 {offsets = [0, 0], sizes = [1, 32], strides = [1, 1]} : vector<1x64xf32> to vector<1x32xf32>
    %110 = vector.extract_strided_slice %108 {offsets = [0, 32], sizes = [1, 32], strides = [1, 1]} : vector<1x64xf32> to vector<1x32xf32>
    %111 = vector.extract_strided_slice %102 {offsets = [0, 64], sizes = [1, 32], strides = [1, 1]} : vector<1x128xf32> to vector<1x32xf32>
    %112 = vector.extract_strided_slice %102 {offsets = [0, 96], sizes = [1, 32], strides = [1, 1]} : vector<1x128xf32> to vector<1x32xf32>
    %113 = arith.mulf %109, %112 : vector<1x32xf32>
    %114 = arith.addf %111, %113 : vector<1x32xf32>
    %115 = math.tanh %114 : vector<1x32xf32>
    %cst_33 = arith.constant 1.000000e+00 : f32
    %116 = vector.broadcast %cst_33 : f32 to vector<1x32xf32>
    %117 = arith.subf %116, %110 : vector<1x32xf32>
    %118 = arith.mulf %117, %115 : vector<1x32xf32>
    %119 = arith.mulf %110, %94 : vector<1x32xf32>
    %120 = arith.addf %118, %119 : vector<1x32xf32>
    %c3_i32_34 = arith.constant 3 : i32
    %121 = arith.addi %7, %c3_i32_34 : i32
    %c1_i32_35 = arith.constant 1 : i32
    %122 = arith.cmpi slt, %121, %c1_i32_35 : i32
    %123 = arith.select %122, %120, %94 : vector<1x32xf32>
    %c4_i32 = arith.constant 4 : i32
    %124 = arith.addi %7, %c4_i32 : i32
    %125 = arith.index_cast %124 : i32 to index
    %126 = memref.load %arg1[%125] : memref<8xi32, #tpu.memory_space<smem>>
    %127 = arith.index_cast %126 : i32 to index
    %c0_36 = arith.constant 0 : index
    %c0_37 = arith.constant 0 : index
    %128 = vector.load %arg3[%127, %c0_36, %c0_37] : memref<16x1x128xf32, #tpu.memory_space<vmem>>, vector<1x1x128xf32>
    %129 = vector.shape_cast %128 : vector<1x1x128xf32> to vector<1x128xf32>
    %cst_38 = arith.constant dense<0.000000e+00> : vector<1x128xf32>
    %130 = tpu.matmul %123, %3, %cst_38 {dimension_numbers = #tpu.dot_dimension_numbers<[1], [0], [0], [1], [0, 0, 1, 1], [], []>, precision = #tpu.contract_precision<fp32>} : vector<1x32xf32>, vector<32x128xf32>, vector<1x128xf32> -> vector<1x128xf32>
    %131 = arith.addf %129, %130 : vector<1x128xf32>
    %132 = vector.extract_strided_slice %131 {offsets = [0, 0], sizes = [1, 64], strides = [1, 1]} : vector<1x128xf32> to vector<1x64xf32>
    %133 = arith.negf %132 : vector<1x64xf32>
    %134 = math.exp %133 : vector<1x64xf32>
    %cst_39 = arith.constant 1.000000e+00 : f32
    %135 = vector.broadcast %cst_39 : f32 to vector<1x64xf32>
    %136 = arith.addf %135, %134 : vector<1x64xf32>
    %137 = arith.divf %135, %136 : vector<1x64xf32>
    %138 = vector.extract_strided_slice %137 {offsets = [0, 0], sizes = [1, 32], strides = [1, 1]} : vector<1x64xf32> to vector<1x32xf32>
    %139 = vector.extract_strided_slice %137 {offsets = [0, 32], sizes = [1, 32], strides = [1, 1]} : vector<1x64xf32> to vector<1x32xf32>
    %140 = vector.extract_strided_slice %131 {offsets = [0, 64], sizes = [1, 32], strides = [1, 1]} : vector<1x128xf32> to vector<1x32xf32>
    %141 = vector.extract_strided_slice %131 {offsets = [0, 96], sizes = [1, 32], strides = [1, 1]} : vector<1x128xf32> to vector<1x32xf32>
    %142 = arith.mulf %138, %141 : vector<1x32xf32>
    %143 = arith.addf %140, %142 : vector<1x32xf32>
    %144 = math.tanh %143 : vector<1x32xf32>
    %cst_40 = arith.constant 1.000000e+00 : f32
    %145 = vector.broadcast %cst_40 : f32 to vector<1x32xf32>
    %146 = arith.subf %145, %139 : vector<1x32xf32>
    %147 = arith.mulf %146, %144 : vector<1x32xf32>
    %148 = arith.mulf %139, %123 : vector<1x32xf32>
    %149 = arith.addf %147, %148 : vector<1x32xf32>
    %c4_i32_41 = arith.constant 4 : i32
    %150 = arith.addi %7, %c4_i32_41 : i32
    %c1_i32_42 = arith.constant 1 : i32
    %151 = arith.cmpi slt, %150, %c1_i32_42 : i32
    %152 = arith.select %151, %149, %123 : vector<1x32xf32>
    %c5_i32 = arith.constant 5 : i32
    %153 = arith.addi %7, %c5_i32 : i32
    %154 = arith.index_cast %153 : i32 to index
    %155 = memref.load %arg1[%154] : memref<8xi32, #tpu.memory_space<smem>>
    %156 = arith.index_cast %155 : i32 to index
    %c0_43 = arith.constant 0 : index
    %c0_44 = arith.constant 0 : index
    %157 = vector.load %arg3[%156, %c0_43, %c0_44] : memref<16x1x128xf32, #tpu.memory_space<vmem>>, vector<1x1x128xf32>
    %158 = vector.shape_cast %157 : vector<1x1x128xf32> to vector<1x128xf32>
    %cst_45 = arith.constant dense<0.000000e+00> : vector<1x128xf32>
    %159 = tpu.matmul %152, %3, %cst_45 {dimension_numbers = #tpu.dot_dimension_numbers<[1], [0], [0], [1], [0, 0, 1, 1], [], []>, precision = #tpu.contract_precision<fp32>} : vector<1x32xf32>, vector<32x128xf32>, vector<1x128xf32> -> vector<1x128xf32>
    %160 = arith.addf %158, %159 : vector<1x128xf32>
    %161 = vector.extract_strided_slice %160 {offsets = [0, 0], sizes = [1, 64], strides = [1, 1]} : vector<1x128xf32> to vector<1x64xf32>
    %162 = arith.negf %161 : vector<1x64xf32>
    %163 = math.exp %162 : vector<1x64xf32>
    %cst_46 = arith.constant 1.000000e+00 : f32
    %164 = vector.broadcast %cst_46 : f32 to vector<1x64xf32>
    %165 = arith.addf %164, %163 : vector<1x64xf32>
    %166 = arith.divf %164, %165 : vector<1x64xf32>
    %167 = vector.extract_strided_slice %166 {offsets = [0, 0], sizes = [1, 32], strides = [1, 1]} : vector<1x64xf32> to vector<1x32xf32>
    %168 = vector.extract_strided_slice %166 {offsets = [0, 32], sizes = [1, 32], strides = [1, 1]} : vector<1x64xf32> to vector<1x32xf32>
    %169 = vector.extract_strided_slice %160 {offsets = [0, 64], sizes = [1, 32], strides = [1, 1]} : vector<1x128xf32> to vector<1x32xf32>
    %170 = vector.extract_strided_slice %160 {offsets = [0, 96], sizes = [1, 32], strides = [1, 1]} : vector<1x128xf32> to vector<1x32xf32>
    %171 = arith.mulf %167, %170 : vector<1x32xf32>
    %172 = arith.addf %169, %171 : vector<1x32xf32>
    %173 = math.tanh %172 : vector<1x32xf32>
    %cst_47 = arith.constant 1.000000e+00 : f32
    %174 = vector.broadcast %cst_47 : f32 to vector<1x32xf32>
    %175 = arith.subf %174, %168 : vector<1x32xf32>
    %176 = arith.mulf %175, %173 : vector<1x32xf32>
    %177 = arith.mulf %168, %152 : vector<1x32xf32>
    %178 = arith.addf %176, %177 : vector<1x32xf32>
    %c5_i32_48 = arith.constant 5 : i32
    %179 = arith.addi %7, %c5_i32_48 : i32
    %c1_i32_49 = arith.constant 1 : i32
    %180 = arith.cmpi slt, %179, %c1_i32_49 : i32
    %181 = arith.select %180, %178, %152 : vector<1x32xf32>
    %c6_i32 = arith.constant 6 : i32
    %182 = arith.addi %7, %c6_i32 : i32
    %183 = arith.index_cast %182 : i32 to index
    %184 = memref.load %arg1[%183] : memref<8xi32, #tpu.memory_space<smem>>
    %185 = arith.index_cast %184 : i32 to index
    %c0_50 = arith.constant 0 : index
    %c0_51 = arith.constant 0 : index
    %186 = vector.load %arg3[%185, %c0_50, %c0_51] : memref<16x1x128xf32, #tpu.memory_space<vmem>>, vector<1x1x128xf32>
    %187 = vector.shape_cast %186 : vector<1x1x128xf32> to vector<1x128xf32>
    %cst_52 = arith.constant dense<0.000000e+00> : vector<1x128xf32>
    %188 = tpu.matmul %181, %3, %cst_52 {dimension_numbers = #tpu.dot_dimension_numbers<[1], [0], [0], [1], [0, 0, 1, 1], [], []>, precision = #tpu.contract_precision<fp32>} : vector<1x32xf32>, vector<32x128xf32>, vector<1x128xf32> -> vector<1x128xf32>
    %189 = arith.addf %187, %188 : vector<1x128xf32>
    %190 = vector.extract_strided_slice %189 {offsets = [0, 0], sizes = [1, 64], strides = [1, 1]} : vector<1x128xf32> to vector<1x64xf32>
    %191 = arith.negf %190 : vector<1x64xf32>
    %192 = math.exp %191 : vector<1x64xf32>
    %cst_53 = arith.constant 1.000000e+00 : f32
    %193 = vector.broadcast %cst_53 : f32 to vector<1x64xf32>
    %194 = arith.addf %193, %192 : vector<1x64xf32>
    %195 = arith.divf %193, %194 : vector<1x64xf32>
    %196 = vector.extract_strided_slice %195 {offsets = [0, 0], sizes = [1, 32], strides = [1, 1]} : vector<1x64xf32> to vector<1x32xf32>
    %197 = vector.extract_strided_slice %195 {offsets = [0, 32], sizes = [1, 32], strides = [1, 1]} : vector<1x64xf32> to vector<1x32xf32>
    %198 = vector.extract_strided_slice %189 {offsets = [0, 64], sizes = [1, 32], strides = [1, 1]} : vector<1x128xf32> to vector<1x32xf32>
    %199 = vector.extract_strided_slice %189 {offsets = [0, 96], sizes = [1, 32], strides = [1, 1]} : vector<1x128xf32> to vector<1x32xf32>
    %200 = arith.mulf %196, %199 : vector<1x32xf32>
    %201 = arith.addf %198, %200 : vector<1x32xf32>
    %202 = math.tanh %201 : vector<1x32xf32>
    %cst_54 = arith.constant 1.000000e+00 : f32
    %203 = vector.broadcast %cst_54 : f32 to vector<1x32xf32>
    %204 = arith.subf %203, %197 : vector<1x32xf32>
    %205 = arith.mulf %204, %202 : vector<1x32xf32>
    %206 = arith.mulf %197, %181 : vector<1x32xf32>
    %207 = arith.addf %205, %206 : vector<1x32xf32>
    %c6_i32_55 = arith.constant 6 : i32
    %208 = arith.addi %7, %c6_i32_55 : i32
    %c1_i32_56 = arith.constant 1 : i32
    %209 = arith.cmpi slt, %208, %c1_i32_56 : i32
    %210 = arith.select %209, %207, %181 : vector<1x32xf32>
    %c7_i32 = arith.constant 7 : i32
    %211 = arith.addi %7, %c7_i32 : i32
    %212 = arith.index_cast %211 : i32 to index
    %213 = memref.load %arg1[%212] : memref<8xi32, #tpu.memory_space<smem>>
    %214 = arith.index_cast %213 : i32 to index
    %c0_57 = arith.constant 0 : index
    %c0_58 = arith.constant 0 : index
    %215 = vector.load %arg3[%214, %c0_57, %c0_58] : memref<16x1x128xf32, #tpu.memory_space<vmem>>, vector<1x1x128xf32>
    %216 = vector.shape_cast %215 : vector<1x1x128xf32> to vector<1x128xf32>
    %cst_59 = arith.constant dense<0.000000e+00> : vector<1x128xf32>
    %217 = tpu.matmul %210, %3, %cst_59 {dimension_numbers = #tpu.dot_dimension_numbers<[1], [0], [0], [1], [0, 0, 1, 1], [], []>, precision = #tpu.contract_precision<fp32>} : vector<1x32xf32>, vector<32x128xf32>, vector<1x128xf32> -> vector<1x128xf32>
    %218 = arith.addf %216, %217 : vector<1x128xf32>
    %219 = vector.extract_strided_slice %218 {offsets = [0, 0], sizes = [1, 64], strides = [1, 1]} : vector<1x128xf32> to vector<1x64xf32>
    %220 = arith.negf %219 : vector<1x64xf32>
    %221 = math.exp %220 : vector<1x64xf32>
    %cst_60 = arith.constant 1.000000e+00 : f32
    %222 = vector.broadcast %cst_60 : f32 to vector<1x64xf32>
    %223 = arith.addf %222, %221 : vector<1x64xf32>
    %224 = arith.divf %222, %223 : vector<1x64xf32>
    %225 = vector.extract_strided_slice %224 {offsets = [0, 0], sizes = [1, 32], strides = [1, 1]} : vector<1x64xf32> to vector<1x32xf32>
    %226 = vector.extract_strided_slice %224 {offsets = [0, 32], sizes = [1, 32], strides = [1, 1]} : vector<1x64xf32> to vector<1x32xf32>
    %227 = vector.extract_strided_slice %218 {offsets = [0, 64], sizes = [1, 32], strides = [1, 1]} : vector<1x128xf32> to vector<1x32xf32>
    %228 = vector.extract_strided_slice %218 {offsets = [0, 96], sizes = [1, 32], strides = [1, 1]} : vector<1x128xf32> to vector<1x32xf32>
    %229 = arith.mulf %225, %228 : vector<1x32xf32>
    %230 = arith.addf %227, %229 : vector<1x32xf32>
    %231 = math.tanh %230 : vector<1x32xf32>
    %cst_61 = arith.constant 1.000000e+00 : f32
    %232 = vector.broadcast %cst_61 : f32 to vector<1x32xf32>
    %233 = arith.subf %232, %226 : vector<1x32xf32>
    %234 = arith.mulf %233, %231 : vector<1x32xf32>
    %235 = arith.mulf %226, %210 : vector<1x32xf32>
    %236 = arith.addf %234, %235 : vector<1x32xf32>
    %c7_i32_62 = arith.constant 7 : i32
    %237 = arith.addi %7, %c7_i32_62 : i32
    %c1_i32_63 = arith.constant 1 : i32
    %238 = arith.cmpi slt, %237, %c1_i32_63 : i32
    %239 = arith.select %238, %236, %210 : vector<1x32xf32>
    %240 = tpu.concatenate %33, %62, %91, %120, %149, %178, %207, %236 in 0 : vector<1x32xf32>, vector<1x32xf32>, vector<1x32xf32>, vector<1x32xf32>, vector<1x32xf32>, vector<1x32xf32>, vector<1x32xf32>, vector<1x32xf32> -> vector<8x32xf32>
    %cst_64 = arith.constant dense<0.000000e+00> : vector<8x128xf32>
    %241 = tpu.matmul %240, %4, %cst_64 {dimension_numbers = #tpu.dot_dimension_numbers<[1], [0], [0], [1], [0, 0, 1, 1], [], []>, precision = #tpu.contract_precision<fp32>} : vector<8x32xf32>, vector<32x128xf32>, vector<8x128xf32> -> vector<8x128xf32>
    %242 = vector.broadcast %5 : vector<1x128xf32> to vector<8x128xf32>
    %243 = arith.addf %241, %242 : vector<8x128xf32>
    %cst_65 = arith.constant dense<0xFF800000> : vector<8xf32>
    %244 = vector.multi_reduction <maximumf>, %243, %cst_65 [1] : vector<8x128xf32> to vector<8xf32>
    %245 = vector.shape_cast %244 : vector<8xf32> to vector<8x1xf32>
    %246 = vector.broadcast %245 : vector<8x1xf32> to vector<8x128xf32>
    %247 = arith.subf %243, %246 : vector<8x128xf32>
    %248 = math.exp %247 : vector<8x128xf32>
    %cst_66 = arith.constant dense<0.000000e+00> : vector<8xf32>
    %249 = vector.multi_reduction <add>, %248, %cst_66 [1] : vector<8x128xf32> to vector<8xf32>
    %250 = vector.shape_cast %249 : vector<8xf32> to vector<8x1xf32>
    %251 = math.log %250 : vector<8x1xf32>
    %252 = vector.broadcast %251 : vector<8x1xf32> to vector<8x128xf32>
    %253 = arith.subf %247, %252 : vector<8x128xf32>
    %c0_67 = arith.constant 0 : index
    %c0_68 = arith.constant 0 : index
    %254 = vector.load %arg7[%c0_67, %c0_68] : memref<8x128xf32, #tpu.memory_space<vmem>>, vector<8x128xf32>
    tpu.vector_store %arg7[%c0_67, %c0_68], %253 {strides = array<i32>} : memref<8x128xf32, #tpu.memory_space<vmem>>, vector<8x128xf32>,
    %c0_69 = arith.constant 0 : index
    %c0_70 = arith.constant 0 : index
    %255 = vector.load %arg8[%c0_69, %c0_70] : memref<1x32xf32, #tpu.memory_space<vmem>>, vector<1x32xf32>
    tpu.vector_store %arg8[%c0_69, %c0_70], %239 {strides = array<i32>} : memref<1x32xf32, #tpu.memory_space<vmem>>, vector<1x32xf32>,
    return
  }
  func.func @transform_0(%arg0: i32, %arg1: memref<8xi32, #tpu.memory_space<smem>>) -> (i32, i32) {
    %c0_i32 = arith.constant 0 : i32
    %c0_i32_0 = arith.constant 0 : i32
    %c0_i32_1 = arith.constant 0 : i32
    return %c0_i32, %c0_i32_0 : i32, i32
  }
  func.func @transform_1(%arg0: i32, %arg1: memref<8xi32, #tpu.memory_space<smem>>) -> (i32, i32, i32) {
    %c0_i32 = arith.constant 0 : i32
    %c0_i32_0 = arith.constant 0 : i32
    %c0_i32_1 = arith.constant 0 : i32
    %c0_i32_2 = arith.constant 0 : i32
    return %c0_i32, %c0_i32_0, %c0_i32_1 : i32, i32, i32
  }
  func.func @transform_2(%arg0: i32, %arg1: memref<8xi32, #tpu.memory_space<smem>>) -> (i32, i32) {
    %c0_i32 = arith.constant 0 : i32
    %c0_i32_0 = arith.constant 0 : i32
    %c0_i32_1 = arith.constant 0 : i32
    return %c0_i32, %c0_i32_0 : i32, i32
  }
  func.func @transform_3(%arg0: i32, %arg1: memref<8xi32, #tpu.memory_space<smem>>) -> (i32, i32) {
    %c0_i32 = arith.constant 0 : i32
    %c0_i32_0 = arith.constant 0 : i32
    %c0_i32_1 = arith.constant 0 : i32
    return %c0_i32, %c0_i32_0 : i32, i32
  }
  func.func @transform_4(%arg0: i32, %arg1: memref<8xi32, #tpu.memory_space<smem>>) -> (i32, i32) {
    %c0_i32 = arith.constant 0 : i32
    %c0_i32_0 = arith.constant 0 : i32
    %c0_i32_1 = arith.constant 0 : i32
    return %c0_i32, %c0_i32_0 : i32, i32
  }
  func.func @transform_5(%arg0: i32, %arg1: memref<8xi32, #tpu.memory_space<smem>>) -> (i32, i32) {
    %c0_i32 = arith.constant 0 : i32
    %c0_i32_0 = arith.constant 0 : i32
    return %arg0, %c0_i32 : i32, i32
  }
  func.func @transform_6(%arg0: i32, %arg1: memref<8xi32, #tpu.memory_space<smem>>) -> (i32, i32) {
    %c0_i32 = arith.constant 0 : i32
    %c0_i32_0 = arith.constant 0 : i32
    %c0_i32_1 = arith.constant 0 : i32
    return %c0_i32, %c0_i32_0 : i32, i32
  }
}

</mosaic_0001>

<bundles_post_ra>
// kernel: gru_decoder_decode.1
= control target key start
LH: loop header
LB: loop body
LE: loop exit
PB: predicated region body
PF: predicated region fallthrough
CT: control target
= control target key end

     0   :  { %s2481_s27 = smov [#allocation3]   ;;  %s2973_s0 = inlined_call_operand.vmem [shape: s32[8], index: 0, kind: input, shape index: {}]   ;;  %s2974_s1 = inlined_call_operand.vmem [shape: f32[1,32], index: 1, kind: input, shape index: {}]   ;;  %s2975_s2 = inlined_call_operand.hbm [shape: f32[16,1,128], index: 2, kind: input, shape index: {}]   ;;  %s2976_s3 = inlined_call_operand.hbm [shape: f32[32,128], index: 3, kind: input, shape index: {}]   ;;  %s2977_s4 = inlined_call_operand.hbm [shape: f32[32,128], index: 4, kind: input, shape index: {}]   ;;  %s2978_s5 = inlined_call_operand.vmem [shape: f32[1,128], index: 5, kind: input, shape index: {}]   ;;  %s2979_s6 = inlined_call_operand.vmem [shape: f32[8,128], index: 6, kind: output, shape index: {0}]   ;;  %s2980_s7 = inlined_call_operand.hbm [shape: f32[1,32], index: 7, kind: output, shape index: {1}]  }
   0x1   :  { %s14_s26 = sshll.u32 %s2973_s0, 4  ;;  %s15_s26 = int_to_ptr.vmem [resolvable:$true] %s14_s26 }
   0x2   :  { %17 = dma.vmem_to_smem %s15_s26, 16, %s2481_s27, [#allocation2] }
   0x3   :  { %2473 = dma.done.wait [#allocation2], 16 }
   0x4   :  { %2474 = vsyncadd [#allocation2], 4294967280 }
   0x5   :  { %20 = sfence }
   0x6   :  { %21 = vsyncpa [#allocation5], 0 }
   0x7   :  { %22 = vsyncpa [#allocation8], 0  ;;  %s43_s30 = sshll.u32 %s2976_s3, 4  ;;  %s44_s30 = int_to_ptr.hbm [resolvable:$true] %s43_s30 }
   0x8   :  { %23 = vsyncpa [#allocation6], 0  ;;  %s2482_s8 = smov [#allocation7]   ;;  %s30_s0 = sshll.u32 %s2975_s2, 4  ;;  %s31_s0 = int_to_ptr.hbm [resolvable:$true] %s30_s0 }
   0x9   :  { %s45_s9 = sshll.u32 %s2482_s8, 4  ;;  %s2483_s12 = smov 128   ;;  %s46_s9 = int_to_ptr.vmem [resolvable:$true] %s45_s9 }
   0xa   :  { %s2484_s13 = smov 8   ;;  %s2485_s14 = smov [#allocation4]  }
   0xb   :  { %51 = dma.hbm_to_vmem [thread:$0]  %s44_s30, 512, %s46_s9, [#allocation8], %s2483_s12, %s2483_s12, %s2484_s13  }
   0xc   :  { %s32_s15 = sshll.u32 %s2485_s14, 4  ;;  %s2486_s16 = smov 16   ;;  %s33_s15 = int_to_ptr.vmem [resolvable:$true] %s32_s15 }
   0xd   :  { %s2487_s17 = smov 1   ;;  %s56_s19 = sshll.u32 %s2977_s4, 4  ;;  %s57_s19 = int_to_ptr.hbm [resolvable:$true] %s56_s19 }
   0xe   :  { %38 = dma.hbm_to_vmem [thread:$0]  %s31_s0, 256, %s33_s15, [#allocation5], %s2486_s16, %s2486_s16, %s2487_s17  }
   0xf   :  { %s2488_s20 = smov [#allocation9]  }
  0x10   :  { %s58_s21 = sshll.u32 %s2488_s20, 4  ;;  %s59_s21 = int_to_ptr.vmem [resolvable:$true] %s58_s21 }
  0x11   :  { %64 = dma.hbm_to_vmem [thread:$0]  %s57_s19, 512, %s59_s21, [#allocation8], %s2483_s12, %s2483_s12, %s2484_s13  }
  0x12   :  { %2475 = dma.done.wait [#allocation5], 256  }
  0x13   :  { %2476 = vsyncadd [#allocation5], 4294967040 }
  0x14   :  { %2477 = dma.done.wait [#allocation8], 1024  }
  0x15   :  { %2478 = vsyncadd [#allocation8], 4294966272  ;;  %vm84_vm0 = vcmask 253952   ;;  %v89_v0 = vld [vmem:[#allocation7 + $0x18] sm:$0xff]  ;;  %v88_v1 = vld [vmem:[#allocation7 + $0x10] sm:$0xff]  ;;  %vm100_vm1 = vcmask 261120  }
  0x16   :  { %v87_v2 = vld [vmem:[#allocation7 + $0x8] sm:$0xff]  ;;  %v2545_v3 = vand.u32 4294901760, %v89_v0  ;;  %v2547_v4 = vand.u32 4294901760, %v88_v1  ;;  %v86_v6 = vld [vmem:[#allocation7] sm:$0xff]  ;;  %v83_v7 = vld [vmem:[%s2974_s1] sm:$0x1] }
  0x17   :  { %v2549_v5 = vand.u32 4294901760, %v87_v2  ;;  %v2554_v8 = vand.u32 4294901760, %v86_v6  ;;  %85 = vst.msk [vmem:[#allocation10] sm:$0x1] %vm84_vm0, %v83_v7  ;;  %s97_s1 = sld [smem:[#allocation3]]  ;;  %s2489_s23 = smov 32  }
  0x18   :  { %v2558_v9 = vsub.f32 %v89_v0, %v2545_v3  ;;  %v2561_v10 = vsub.f32 %v88_v1, %v2547_v4  ;;  %217 = vmatpush.msra.mxu3 %v2545_v3  ;;  %117 = vmatpush.msra.mxu0 %v2545_v3  ;;  %s2490_s24 = smov 64   ;;  %s2491_s25 = smov 96  }
  0x19   :  { %v2566_v11 = vsub.f32 %v87_v2, %v2549_v5  ;;  %v2569_v12 = vsub.f32 %v86_v6, %v2554_v8  ;;  %s2286_s26 = sld [smem:[#allocation3 + $0x1]]  ;;  %s2492_s3 = smov [#allocation10]  }
  0x1a   :  { %188 = vmatpush.msra.mxu2 %v2558_v9  ;;  %v2573_v13 = vand.u32 4294901760, %v2558_v9  ;;  %219 = vmatpush.msra.mxu3 %v2547_v4  ;;  %v2577_v14 = vand.u32 4294901760, %v2561_v10  ;;  %s2288_s28 = sld [smem:[#allocation3 + $0x2]]  ;;  %s2262_s18 = sshll.u32 %s2492_s3, 4  ;;  %s2263_s18 = int_to_ptr.vmem [resolvable:$true] %s2262_s18 }
  0x1b   :  { %v2580_v15 = vand.u32 4294901760, %v2566_v11  ;;  %119 = vmatpush.msra.mxu0 %v2547_v4  ;;  %v2584_v16 = vand.u32 4294901760, %v2569_v12  ;;  %s2290_s30 = sld [smem:[#allocation3 + $0x3]]  ;;  %s2264_s20 = sshll.u32 %s2980_s7, 4  ;;  %s2265_s20 = int_to_ptr.hbm [resolvable:$true] %s2264_s20 }
  0x1c   :  { %191 = vmatpush.msra.mxu2 %v2561_v10  ;;  %v148_v17 = vsub.f32 %v2558_v9, %v2573_v13  ;;  %v154_v18 = vsub.f32 %v2561_v10, %v2577_v14  ;;  %221 = vmatpush.msra.mxu3 %v2549_v5  ;;  %s2292_s9 = sld [smem:[#allocation3 + $0x4]] }
  0x1d   :  { %v160_v19 = vsub.f32 %v2566_v11, %v2580_v15  ;;  %121 = vmatpush.msra.mxu0 %v2549_v5  ;;  %v166_v23 = vsub.f32 %v2569_v12, %v2584_v16  ;;  %s98_s22 = scalar_lea.vmem [#allocation4], %s97_s1  ;;  %s2294_s11 = sld [smem:[#allocation3 + $0x5]] }
  0x1e   :  { %v2595_v20 = vand.u32 4294901760, %v148_v17  ;;  %194 = vmatpush.msra.mxu2 %v2566_v11  ;;  %v2598_v21 = vand.u32 4294901760, %v154_v18  ;;  %v2600_v22 = vld [vmem:[#allocation10] sm:$0x1]  ;;  %223 = vmatpush.msra.mxu3 %v2554_v8  ;;  %v99_v42 = vld [vmem:[%s98_s22] sm:$0x1] }
  0x1f   :  { %v102_v24 = vsel %vm100_vm1, %v2600_v22, 0  ;;  %123 = vmatpush.msra.mxu0 %v2554_v8  ;;  %v2610_v26 = vand.u32 4294901760, %v160_v19  ;;  %v2615_v28 = vand.u32 4294901760, %v166_v23  ;;  %s338_s27 = scalar_lea.vmem [#allocation4], %s2286_s26  ;;  %s2296_s12 = sld [smem:[#allocation3 + $0x6]] }
  0x20   :  { %150 = vmatpush.msra.mxu1 %v2595_v20  ;;  %197 = vmatpush.msra.mxu2 %v2569_v12  ;;  %v124_v25 = vand.u32 4294901760, %v102_v24  ;;  %s577_s29 = scalar_lea.vmem [#allocation4], %s2288_s28  ;;  %s2298_s14 = sld [smem:[#allocation3 + $0x7]] }
  0x21   :  { %246 = vmatpush.msrb.mxu0 %v2573_v13  ;;  %392 = vmatpush.msrb.mxu3 %v2595_v20  ;;  %s816_s8 = scalar_lea.vmem [#allocation4], %s2290_s30 }
  0x22   :  { %156 = vmatpush.msra.mxu1 %v2598_v21  ;;  %v125_v27 = vsub.f32 %v102_v24, %v124_v25  ;;  %359 = vmatpush.msrb.mxu2 %v2545_v3  ;;  %s1055_s10 = scalar_lea.vmem [#allocation4], %s2292_s9 }
  0x23   :  { %250 = vmatpush.msrb.mxu0 %v2577_v14  ;;  %398 = vmatpush.msrb.mxu3 %v2598_v21  ;;  %s1294_s0 = scalar_lea.vmem [#allocation4], %s2294_s11 }
  0x24   :  { %200 = vmatmul.f32.vlgmr.msra.gmra.mxu2 %v125_v27  ;;  %162 = vmatpush.msra.mxu1 %v2610_v26  ;;  %v126_v29 = vand.u32 4294901760, %v125_v27 }
  0x25   :  { %254 = vmatpush.msrb.mxu0 %v2580_v15  ;;  %404 = vmatpush.msrb.mxu3 %v2610_v26  ;;  %s1533_s13 = scalar_lea.vmem [#allocation4], %s2296_s12 }
  0x26   :  { %227 = vmatmul.f32.vlgmr.msra.gmra.mxu3 %v126_v29  ;;  %168 = vmatpush.msra.mxu1 %v2615_v28  ;;  %v127_v30 = vsub.f32 %v125_v27, %v126_v29  ;;  %s1772_s15 = scalar_lea.vmem [#allocation4], %s2298_s14 }
  0x27   :  { %170 = vmatmul.f32.vlgmr.msra.gmra.mxu1 %v124_v25  ;;  %258 = vmatpush.msrb.mxu0 %v2584_v16 }
  0x28   :  { %v128_v31 = vand.u32 4294901760, %v127_v30  ;;  %277 = vmatpush.msrb.mxu1 %v2545_v3  ;;  %410 = vmatpush.msrb.mxu3 %v2615_v28 }
  0x29   :  { %361 = vmatpush.msrb.mxu2 %v2547_v4 }
  0x2a   :  { %519 = vmatpush.msra.mxu3 %v2545_v3  ;;  %129 = vmatmul.f32.vlgmr.msra.gmra.mxu0 %v128_v31 }
  0x2b   :  { %279 = vmatpush.msrb.mxu1 %v2547_v4  ;;  %430 = vmatpush.msra.mxu0 %v2558_v9 }
  0x2c   :  { %521 = vmatpush.msra.mxu3 %v2547_v4  ;;  %363 = vmatpush.msrb.mxu2 %v2549_v5 }
  0x2d   :  { %281 = vmatpush.msrb.mxu1 %v2549_v5  ;;  %433 = vmatpush.msra.mxu0 %v2561_v10 }
  0x2e   :  { %523 = vmatpush.msra.mxu3 %v2549_v5  ;;  %365 = vmatpush.msrb.mxu2 %v2554_v8 }
  0x2f   :  { %283 = vmatpush.msrb.mxu1 %v2554_v8  ;;  %436 = vmatpush.msra.mxu0 %v2566_v11 }
  0x30   :  { %285 = vmatmul.f32.vlgmr.msrb.gmra.mxu1 %v124_v25  ;;  %525 = vmatpush.msra.mxu3 %v2554_v8 }
  0x31   :  { %459 = vmatpush.msra.mxu1 %v2545_v3  ;;  %439 = vmatpush.msra.mxu0 %v2569_v12 }
  0x32   :  { %488 = vmatpush.msra.mxu2 %v2573_v13  ;;  %260 = vmatmul.f32.vlgmr.msrb.gmra.mxu0 %v124_v25 }
  0x33   :  { %461 = vmatpush.msra.mxu1 %v2547_v4  ;;  %598 = vmatpush.msrb.mxu0 %v2545_v3 }
  0x34   :  { %492 = vmatpush.msra.mxu2 %v2577_v14 }
  0x35   :  { %463 = vmatpush.msra.mxu1 %v2549_v5  ;;  %600 = vmatpush.msrb.mxu0 %v2547_v4 }
  0x36   :  { %496 = vmatpush.msra.mxu2 %v2580_v15 }
  0x37   :  { %465 = vmatpush.msra.mxu1 %v2554_v8  ;;  %602 = vmatpush.msrb.mxu0 %v2549_v5 }
  0x38   :  { %500 = vmatpush.msra.mxu2 %v2584_v16 }
  0x39   :  { %631 = vmatpush.msrb.mxu1 %v2595_v20  ;;  %604 = vmatpush.msrb.mxu0 %v2554_v8 }
  0x3b   :  { %637 = vmatpush.msrb.mxu1 %v2598_v21 }
  0x3d   :  { %643 = vmatpush.msrb.mxu1 %v2610_v26 }
  0x3f   :  { %649 = vmatpush.msrb.mxu1 %v2615_v28 }
  0xa4   :  { %v171_v32 = vpop.f32.mrf.mxu1 }
  0xa7   :  { %v130_v33 = vpop.f32.mrf.mxu0  ;;  %v201_v34 = vpop.f32.mrf.mxu2 }
  0xa8   :  { %v172_v35 = vadd.f32 %v171_v32, %v130_v33 }
  0xa9   :  { %v228_v37 = vpop.f32.mrf.mxu3 }
  0xaa   :  { %v202_v36 = vadd.f32 %v201_v34, %v172_v35 }
  0xac   :  { %v229_v38 = vadd.f32 %v228_v37, %v202_v36 }
  0xad   :  { %v286_v40 = vpop.f32.mrf.mxu1 }
  0xaf   :  { %v261_v39 = vpop.f32.mrf.mxu0 }
  0xb0   :  { %v262_v41 = vadd.f32 %v261_v39, %v229_v38 }
  0xb2   :  { %v287_v43 = vadd.f32 %v286_v40, %v262_v41 }
  0xb4   :  { %v289_v44 = vadd.f32 %v287_v43, %v99_v42 }
  0xb6   :  { %310 = vrot.lane.b32.xlu0 %v289_v44, %s2489_s23  ;;  %v2285_v45 = vmul.f32 -1.442695, %v289_v44 }
  0xb8   :  { %2313 = vpow2.f32 %v2285_v45 }
  0xbe   :  { %v2314_v46 = vpop.eup %2313 }
  0xbf   :  { %v293_v47 = vadd.f32 1.0, %v2314_v46 }
  0xc1   :  { %2315 = vrcp.f32 %v293_v47  ;;  %v305_v53 = vand.u32 2147483648, %v293_v47  ;;  %vm299_vm3 = vweird.f32 %v293_v47  ;;  %v303_v54 = vand.u32 2147483647, %v293_v47 }
  0xc3   :  { %v306_v56 = vor.u32 1.1754944e-38, %v305_v53  ;;  %vm304_vm5 = vcmp.eq.f32.partialorder %v303_v54, 8.507059e+37 }
  0xc7   :  { %v2316_v48 = vpop.eup %2315 }
  0xc8   :  { %v295_v49 = vmul.f32 %v2316_v48, %v293_v47  ;;  %vm300_vm2 = vweird.f32 %v2316_v48 }
  0xc9   :  { %vm301_vm4 = vmor %vm299_vm3, %vm300_vm2 }
  0xca   :  { %v296_v50 = vsub.f32 1.0, %v295_v49 }
  0xcc   :  { %v297_v51 = vmul.f32 %v2316_v48, %v296_v50 }
  0xce   :  { %v298_v52 = vadd.f32 %v2316_v48, %v297_v51 }
  0xd0   :  { %v302_v55 = vsel %vm301_vm4, %v2316_v48, %v298_v52 }
  0xd1   :  { %v307_v58 = vsel %vm304_vm5, %v306_v56, %v302_v55 }
  0xd2   :  { %v320_v0 = vsub.f32 1.0, %v307_v58 }
 0x128   :  { %v311_v57 = vpop.permute.xlu0 %310 }
 0x129   :  { %v313_v59 = vmul.f32 %v311_v57, %v307_v58 }
 0x12b   :  { %315 = vrot.lane.b32.xlu0 %v313_v59, %s2490_s24 }
 0x19d   :  { %v316_v60 = vpop.permute.xlu0 %315 }
 0x19e   :  { %v318_v61 = vadd.f32 %v316_v60, %v289_v44 }
 0x1a0   :  { %2317 = vtanh.f32 %v318_v61 }
 0x1a6   :  { %v2318_v62 = vpop.eup %2317 }
 0x1a7   :  { %322 = vrot.lane.b32.xlu1 %v2318_v62, %s2491_s25 }
 0x1af   :  { %326 = vrot.lane.b32.xlu1 %v2600_v22, %s2489_s23 }
 0x219   :  { %v323_v63 = vpop.permute.xlu1 %322 }
 0x21a   :  { %v325_v2 = vmul.f32 %v323_v63, %v320_v0 }
 0x221   :  { %v327_v1 = vpop.permute.xlu1 %326 }
 0x222   :  { %v329_v6 = vmul.f32 %v327_v1, %v307_v58 }
 0x224   :  { %v2662_v7 = vadd.f32 %v329_v6, %v325_v2 }
 0x226   :  { %v2665_v17 = vperm.slane %v2662_v7, 0 }
 0x228   :  { %1059 = vrot.lane.b32.xlu1 %v2665_v17, %s2491_s25  ;;  %820 = vrot.lane.b32.xlu0 %v2665_v17, %s2491_s25 }
 0x229   :  { %342 = vrot.lane.b32.xlu2 %v2665_v17, %s2491_s25 }
 0x230   :  { %1776 = vrot.lane.b32.xlu1 %v2665_v17, %s2491_s25  ;;  %1537 = vrot.lane.b32.xlu0 %v2665_v17, %s2491_s25 }
 0x231   :  { %581 = vrot.lane.b32.xlu2 %v2665_v17, %s2491_s25 }
 0x239   :  { %1298 = vrot.lane.b32.xlu2 %v2665_v17, %s2491_s25 }
 0x283   :  { %v343_v18 = vpop.permute.xlu2 %342 }
 0x284   :  { %v344_v19 = vsel %vm100_vm1, %v343_v18, 0 }
 0x285   :  { %v366_v22 = vand.u32 4294901760, %v344_v19 }
 0x287   :  { %v367_v23 = vsub.f32 %v344_v19, %v366_v22  ;;  %412 = vmatmul.f32.vlgmr.msrb.gmra.mxu3 %v366_v22 }
 0x288   :  { %698 = vmatpush.msrb.mxu3 %v2545_v3 }
 0x289   :  { %v368_v24 = vand.u32 4294901760, %v367_v23  ;;  %442 = vmatmul.f32.vlgmr.msra.gmra.mxu0 %v367_v23 }
 0x28a   :  { %700 = vmatpush.msrb.mxu3 %v2547_v4  ;;  %727 = vmatpush.msra.mxu0 %v2573_v13 }
 0x28b   :  { %469 = vmatmul.f32.vlgmr.msra.gmra.mxu1 %v368_v24  ;;  %v582_v25 = vpop.permute.xlu2 %581  ;;  %v369_v27 = vsub.f32 %v367_v23, %v368_v24 }
 0x28c   :  { %v583_v29 = vsel %vm100_vm1, %v582_v25, 0  ;;  %702 = vmatpush.msrb.mxu3 %v2549_v5  ;;  %758 = vmatpush.msra.mxu1 %v2545_v3 }
 0x28d   :  { %v605_v30 = vand.u32 4294901760, %v583_v29  ;;  %v370_v31 = vand.u32 4294901760, %v369_v27  ;;  %731 = vmatpush.msra.mxu0 %v2577_v14 }
 0x28e   :  { %704 = vmatpush.msrb.mxu3 %v2554_v8  ;;  %760 = vmatpush.msra.mxu1 %v2547_v4 }
 0x28f   :  { %v606_v32 = vsub.f32 %v583_v29, %v605_v30  ;;  %371 = vmatmul.f32.vlgmr.msrb.gmra.mxu2 %v370_v31  ;;  %527 = vmatmul.f32.vlgmr.msra.gmra.mxu3 %v366_v22 }
 0x290   :  { %669 = vmatpush.msrb.mxu2 %v2558_v9  ;;  %762 = vmatpush.msra.mxu1 %v2549_v5 }
 0x291   :  { %v607_v33 = vand.u32 4294901760, %v606_v32  ;;  %870 = vmatpush.msra.mxu3 %v2595_v20  ;;  %735 = vmatpush.msra.mxu0 %v2580_v15 }
 0x292   :  { %672 = vmatpush.msrb.mxu2 %v2561_v10  ;;  %764 = vmatpush.msra.mxu1 %v2554_v8 }
 0x293   :  { %v608_v34 = vsub.f32 %v606_v32, %v607_v33  ;;  %651 = vmatmul.f32.vlgmr.msrb.gmra.mxu1 %v605_v30  ;;  %876 = vmatpush.msra.mxu3 %v2598_v21  ;;  %v1299_v48 = vpop.permute.xlu2 %1298 }
 0x294   :  { %675 = vmatpush.msrb.mxu2 %v2566_v11  ;;  %937 = vmatpush.msrb.mxu1 %v2545_v3  ;;  %v1300_v50 = vsel %vm100_vm1, %v1299_v48, 0 }
 0x295   :  { %v609_v35 = vand.u32 4294901760, %v608_v34  ;;  %882 = vmatpush.msra.mxu3 %v2610_v26  ;;  %739 = vmatpush.msra.mxu0 %v2584_v16  ;;  %v2747_v52 = vand.u32 4294901760, %v1300_v50  ;;  %v578_v34 = vld [vmem:[%s577_s29] sm:$0x1] }
 0x296   :  { %678 = vmatpush.msrb.mxu2 %v2569_v12  ;;  %939 = vmatpush.msrb.mxu1 %v2547_v4 }
 0x297   :  { %502 = vmatmul.f32.vlgmr.msra.gmra.mxu2 %v366_v22  ;;  %610 = vmatmul.f32.vlgmr.msrb.gmra.mxu0 %v609_v35  ;;  %v1323_v53 = vsub.f32 %v1300_v50, %v2747_v52 }
 0x298   :  { %708 = vmatmul.f32.vlgmr.msrb.gmra.mxu3 %v607_v33  ;;  %837 = vmatpush.msra.mxu2 %v2545_v3 }
 0x299   :  { %888 = vmatpush.msra.mxu3 %v2615_v28  ;;  %908 = vmatpush.msrb.mxu0 %v2558_v9  ;;  %v1324_v55 = vand.u32 4294901760, %v1323_v53 }
 0x29a   :  { %v1060_v36 = vpop.permute.xlu1 %1059  ;;  %v821_v37 = vpop.permute.xlu0 %820  ;;  %941 = vmatpush.msrb.mxu1 %v2549_v5  ;;  %839 = vmatpush.msra.mxu2 %v2547_v4 }
 0x29b   :  { %997 = vmatpush.msrb.mxu3 %v2545_v3  ;;  %v1061_v38 = vsel %vm100_vm1, %v1060_v36, 0  ;;  %v822_v39 = vsel %vm100_vm1, %v821_v37, 0  ;;  %766 = vmatmul.f32.vlgmr.msra.gmra.mxu1 %v605_v30  ;;  %v1325_v58 = vsub.f32 %v1323_v53, %v1324_v55 }
 0x29c   :  { %v844_v40 = vand.u32 4294901760, %v822_v39  ;;  %911 = vmatpush.msrb.mxu0 %v2561_v10  ;;  %943 = vmatpush.msrb.mxu1 %v2554_v8  ;;  %v2714_v41 = vand.u32 4294901760, %v1061_v38 }
 0x29d   :  { %999 = vmatpush.msrb.mxu3 %v2547_v4  ;;  %841 = vmatpush.msra.mxu2 %v2549_v5  ;;  %v1326_v60 = vand.u32 4294901760, %v1325_v58  ;;  %v1056_v58 = vld [vmem:[%s1055_s10] sm:$0x1] }
 0x29e   :  { %v845_v42 = vsub.f32 %v822_v39, %v844_v40  ;;  %914 = vmatpush.msrb.mxu0 %v2566_v11  ;;  %1109 = vmatpush.msra.mxu1 %v2595_v20  ;;  %v1084_v44 = vsub.f32 %v1061_v38, %v2714_v41 }
 0x29f   :  { %681 = vmatmul.f32.vlgmr.msrb.gmra.mxu2 %v606_v32  ;;  %741 = vmatmul.f32.vlgmr.msra.gmra.mxu0 %v605_v30 }
 0x2a0   :  { %v846_v43 = vand.u32 4294901760, %v845_v42  ;;  %890 = vmatmul.f32.vlgmr.msra.gmra.mxu3 %v844_v40  ;;  %843 = vmatpush.msra.mxu2 %v2554_v8  ;;  %v1085_v47 = vand.u32 4294901760, %v1084_v44 }
 0x2a1   :  { %1001 = vmatpush.msrb.mxu3 %v2549_v5  ;;  %917 = vmatpush.msrb.mxu0 %v2569_v12 }
 0x2a2   :  { %v847_v45 = vsub.f32 %v845_v42, %v846_v43  ;;  %1115 = vmatpush.msra.mxu1 %v2598_v21  ;;  %966 = vmatpush.msrb.mxu2 %v2573_v13  ;;  %v1086_v49 = vsub.f32 %v1084_v44, %v1085_v47  ;;  %v1538_v54 = vpop.permute.xlu0 %1537  ;;  %v1777_v63 = vpop.permute.xlu1 %1776 }
 0x2a3   :  { %947 = vmatmul.f32.vlgmr.msrb.gmra.mxu1 %v846_v43  ;;  %1003 = vmatpush.msrb.mxu3 %v2554_v8  ;;  %v1539_v56 = vsel %vm100_vm1, %v1538_v54, 0  ;;  %v1778_v0 = vsel %vm100_vm1, %v1777_v63, 0 }
 0x2a4   :  { %v848_v46 = vand.u32 4294901760, %v847_v45  ;;  %1076 = vmatpush.msra.mxu0 %v2545_v3  ;;  %1121 = vmatpush.msra.mxu1 %v2610_v26  ;;  %v1087_v51 = vand.u32 4294901760, %v1086_v49  ;;  %v2769_v57 = vand.u32 4294901760, %v1539_v56  ;;  %v1800_v2 = vand.u32 4294901760, %v1778_v0 }
 0x2a5   :  { %1176 = vmatpush.msra.mxu3 %v2545_v3  ;;  %970 = vmatpush.msrb.mxu2 %v2577_v14 }
 0x2a6   :  { %1078 = vmatpush.msra.mxu0 %v2547_v4  ;;  %1127 = vmatpush.msra.mxu1 %v2615_v28  ;;  %v1562_v59 = vsub.f32 %v1539_v56, %v2769_v57  ;;  %v1801_v6 = vsub.f32 %v1778_v0, %v1800_v2 }
 0x2a7   :  { %849 = vmatmul.f32.vlgmr.msra.gmra.mxu2 %v848_v46  ;;  %920 = vmatmul.f32.vlgmr.msrb.gmra.mxu0 %v845_v42  ;;  %v817_v46 = vld [vmem:[%s816_s8] sm:$0x1] }
 0x2a8   :  { %1005 = vmatmul.f32.vlgmr.msrb.gmra.mxu3 %v844_v40  ;;  %974 = vmatpush.msrb.mxu2 %v2580_v15  ;;  %v1563_v61 = vand.u32 4294901760, %v1562_v59 }
 0x2a9   :  { %1178 = vmatpush.msra.mxu3 %v2547_v4  ;;  %1080 = vmatpush.msra.mxu0 %v2549_v5 }
 0x2aa   :  { %1236 = vmatpush.msrb.mxu1 %v2545_v3  ;;  %978 = vmatpush.msrb.mxu2 %v2584_v16  ;;  %v1564_v62 = vsub.f32 %v1562_v59, %v1563_v61 }
 0x2ab   :  { %1129 = vmatmul.f32.vlgmr.msra.gmra.mxu1 %v2714_v41  ;;  %1180 = vmatpush.msra.mxu3 %v2549_v5 }
 0x2ac   :  { %1082 = vmatpush.msra.mxu0 %v2554_v8  ;;  %1238 = vmatpush.msrb.mxu1 %v2547_v4  ;;  %v1565_v1 = vand.u32 4294901760, %v1564_v62 }
 0x2ad   :  { %1182 = vmatpush.msra.mxu3 %v2554_v8  ;;  %1147 = vmatpush.msra.mxu2 %v2558_v9 }
 0x2ae   :  { %1205 = vmatpush.msrb.mxu0 %v2573_v13  ;;  %1240 = vmatpush.msrb.mxu1 %v2549_v5 }
 0x2af   :  { %980 = vmatmul.f32.vlgmr.msrb.gmra.mxu2 %v844_v40  ;;  %1088 = vmatmul.f32.vlgmr.msra.gmra.mxu0 %v1087_v51 }
 0x2b0   :  { %1186 = vmatmul.f32.vlgmr.msra.gmra.mxu3 %v1085_v47  ;;  %1150 = vmatpush.msra.mxu2 %v2561_v10 }
 0x2b1   :  { %1348 = vmatpush.msrb.mxu3 %v2595_v20  ;;  %1209 = vmatpush.msrb.mxu0 %v2577_v14 }
 0x2b2   :  { %1242 = vmatpush.msrb.mxu1 %v2554_v8  ;;  %1153 = vmatpush.msra.mxu2 %v2566_v11 }
 0x2b3   :  { %1354 = vmatpush.msrb.mxu3 %v2598_v21  ;;  %1244 = vmatmul.f32.vlgmr.msrb.gmra.mxu1 %v2714_v41 }
 0x2b4   :  { %1213 = vmatpush.msrb.mxu0 %v2580_v15  ;;  %1415 = vmatpush.msra.mxu1 %v2545_v3 }
 0x2b5   :  { %1360 = vmatpush.msrb.mxu3 %v2610_v26  ;;  %1156 = vmatpush.msra.mxu2 %v2569_v12 }
 0x2b6   :  { %1217 = vmatpush.msrb.mxu0 %v2584_v16  ;;  %1417 = vmatpush.msra.mxu1 %v2547_v4 }
 0x2b7   :  { %1366 = vmatpush.msrb.mxu3 %v2615_v28  ;;  %1159 = vmatmul.f32.vlgmr.msra.gmra.mxu2 %v1084_v44 }
 0x2b8   :  { %1219 = vmatmul.f32.vlgmr.msrb.gmra.mxu0 %v2714_v41  ;;  %1315 = vmatpush.msrb.mxu2 %v2545_v3 }
 0x2b9   :  { %1368 = vmatmul.f32.vlgmr.msrb.gmra.mxu3 %v2747_v52  ;;  %1386 = vmatpush.msra.mxu0 %v2558_v9 }
 0x2ba   :  { %1419 = vmatpush.msra.mxu1 %v2549_v5  ;;  %1475 = vmatpush.msra.mxu3 %v2545_v3 }
 0x2bb   :  { %1317 = vmatpush.msrb.mxu2 %v2547_v4  ;;  %1389 = vmatpush.msra.mxu0 %v2561_v10 }
 0x2bc   :  { %1421 = vmatpush.msra.mxu1 %v2554_v8  ;;  %1477 = vmatpush.msra.mxu3 %v2547_v4 }
 0x2bd   :  { %1319 = vmatpush.msrb.mxu2 %v2549_v5  ;;  %1425 = vmatmul.f32.vlgmr.msra.gmra.mxu1 %v1324_v55 }
 0x2be   :  { %1392 = vmatpush.msra.mxu0 %v2566_v11  ;;  %1479 = vmatpush.msra.mxu3 %v2549_v5 }
 0x2bf   :  { %1587 = vmatpush.msrb.mxu1 %v2595_v20  ;;  %1321 = vmatpush.msrb.mxu2 %v2554_v8 }
 0x2c0   :  { %1395 = vmatpush.msra.mxu0 %v2569_v12  ;;  %1481 = vmatpush.msra.mxu3 %v2554_v8 }
 0x2c1   :  { %1593 = vmatpush.msrb.mxu1 %v2598_v21  ;;  %1327 = vmatmul.f32.vlgmr.msrb.gmra.mxu2 %v1326_v60 }
 0x2c2   :  { %1398 = vmatmul.f32.vlgmr.msra.gmra.mxu0 %v1323_v53  ;;  %1444 = vmatpush.msra.mxu2 %v2573_v13 }
 0x2c3   :  { %1483 = vmatmul.f32.vlgmr.msra.gmra.mxu3 %v2747_v52  ;;  %1554 = vmatpush.msrb.mxu0 %v2545_v3 }
 0x2c4   :  { %1599 = vmatpush.msrb.mxu1 %v2610_v26  ;;  %1654 = vmatpush.msrb.mxu3 %v2545_v3 }
 0x2c5   :  { %1448 = vmatpush.msra.mxu2 %v2577_v14  ;;  %1556 = vmatpush.msrb.mxu0 %v2547_v4 }
 0x2c6   :  { %1605 = vmatpush.msrb.mxu1 %v2615_v28  ;;  %1656 = vmatpush.msrb.mxu3 %v2547_v4 }
 0x2c7   :  { %1452 = vmatpush.msra.mxu2 %v2580_v15  ;;  %1607 = vmatmul.f32.vlgmr.msrb.gmra.mxu1 %v2769_v57 }
 0x2c8   :  { %1558 = vmatpush.msrb.mxu0 %v2549_v5  ;;  %1658 = vmatpush.msrb.mxu3 %v2549_v5 }
 0x2c9   :  { %1714 = vmatpush.msra.mxu1 %v2545_v3  ;;  %1456 = vmatpush.msra.mxu2 %v2584_v16 }
 0x2ca   :  { %1560 = vmatpush.msrb.mxu0 %v2554_v8  ;;  %1660 = vmatpush.msrb.mxu3 %v2554_v8 }
 0x2cb   :  { %1716 = vmatpush.msra.mxu1 %v2547_v4  ;;  %1458 = vmatmul.f32.vlgmr.msra.gmra.mxu2 %v2747_v52 }
 0x2cc   :  { %1566 = vmatmul.f32.vlgmr.msrb.gmra.mxu0 %v1565_v1  ;;  %1625 = vmatpush.msrb.mxu2 %v2558_v9 }
 0x2cd   :  { %1664 = vmatmul.f32.vlgmr.msrb.gmra.mxu3 %v1563_v61  ;;  %1683 = vmatpush.msra.mxu0 %v2573_v13 }
 0x2ce   :  { %1718 = vmatpush.msra.mxu1 %v2549_v5  ;;  %1826 = vmatpush.msra.mxu3 %v2595_v20  ;;  %v1802_v20 = vand.u32 4294901760, %v1801_v6 }
 0x2cf   :  { %1628 = vmatpush.msrb.mxu2 %v2561_v10  ;;  %1687 = vmatpush.msra.mxu0 %v2577_v14 }
 0x2d0   :  { %1720 = vmatpush.msra.mxu1 %v2554_v8  ;;  %1832 = vmatpush.msra.mxu3 %v2598_v21  ;;  %v1803_v21 = vsub.f32 %v1801_v6, %v1802_v20 }
 0x2d1   :  { %1631 = vmatpush.msrb.mxu2 %v2566_v11  ;;  %1722 = vmatmul.f32.vlgmr.msra.gmra.mxu1 %v2769_v57 }
 0x2d2   :  { %1691 = vmatpush.msra.mxu0 %v2580_v15  ;;  %1838 = vmatpush.msra.mxu3 %v2610_v26 }
 0x2d3   :  { %1893 = vmatpush.msrb.mxu1 %v2545_v3  ;;  %1634 = vmatpush.msrb.mxu2 %v2569_v12 }
 0x2d4   :  { %1695 = vmatpush.msra.mxu0 %v2584_v16  ;;  %1844 = vmatpush.msra.mxu3 %v2615_v28 }
 0x2d5   :  { %1895 = vmatpush.msrb.mxu1 %v2547_v4  ;;  %1637 = vmatmul.f32.vlgmr.msrb.gmra.mxu2 %v1562_v59 }
 0x2d6   :  { %1697 = vmatmul.f32.vlgmr.msra.gmra.mxu0 %v2769_v57  ;;  %1793 = vmatpush.msra.mxu2 %v2545_v3 }
 0x2d7   :  { %1846 = vmatmul.f32.vlgmr.msra.gmra.mxu3 %v1800_v2  ;;  %1864 = vmatpush.msrb.mxu0 %v2558_v9  ;;  %v1804_v9 = vand.u32 4294901760, %v1803_v21 }
 0x2d8   :  { %1897 = vmatpush.msrb.mxu1 %v2549_v5  ;;  %1953 = vmatpush.msrb.mxu3 %v2545_v3 }
 0x2d9   :  { %1795 = vmatpush.msra.mxu2 %v2547_v4  ;;  %1867 = vmatpush.msrb.mxu0 %v2561_v10 }
 0x2da   :  { %1899 = vmatpush.msrb.mxu1 %v2554_v8  ;;  %1955 = vmatpush.msrb.mxu3 %v2547_v4 }
 0x2db   :  { %1797 = vmatpush.msra.mxu2 %v2549_v5  ;;  %1903 = vmatmul.f32.vlgmr.msrb.gmra.mxu1 %v1802_v20 }
 0x2dc   :  { %1870 = vmatpush.msrb.mxu0 %v2566_v11  ;;  %1957 = vmatpush.msrb.mxu3 %v2549_v5 }
 0x2dd   :  { %1799 = vmatpush.msra.mxu2 %v2554_v8 }
 0x2de   :  { %1873 = vmatpush.msrb.mxu0 %v2569_v12  ;;  %1959 = vmatpush.msrb.mxu3 %v2554_v8 }
 0x2df   :  { %1805 = vmatmul.f32.vlgmr.msra.gmra.mxu2 %v1804_v9  ;;  %1876 = vmatmul.f32.vlgmr.msrb.gmra.mxu0 %v1801_v6 }
 0x2e0   :  { %1922 = vmatpush.msrb.mxu2 %v2573_v13  ;;  %1961 = vmatmul.f32.vlgmr.msrb.gmra.mxu3 %v1800_v2 }
 0x2e2   :  { %1926 = vmatpush.msrb.mxu2 %v2577_v14  ;;  %v339_v14 = vld [vmem:[%s338_s27] sm:$0x1] }
 0x2e4   :  { %1930 = vmatpush.msrb.mxu2 %v2580_v15 }
 0x2e6   :  { %1934 = vmatpush.msrb.mxu2 %v2584_v16 }
 0x2e7   :  { %1936 = vmatmul.f32.vlgmr.msrb.gmra.mxu2 %v1800_v2 }
 0x306   :  { %v443_v4 = vpop.f32.mrf.mxu0 }
 0x308   :  { %v470_v5 = vpop.f32.mrf.mxu1 }
 0x30a   :  { %v413_v3 = vpop.f32.mrf.mxu3 }
 0x310   :  { %v652_v28 = vpop.f32.mrf.mxu1 }
 0x312   :  { %v372_v10 = vpop.f32.mrf.mxu2  ;;  %v528_v11 = vpop.f32.mrf.mxu3 }
 0x313   :  { %v414_v12 = vadd.f32 %v413_v3, %v372_v10 }
 0x314   :  { %v611_v8 = vpop.f32.mrf.mxu0 }
 0x315   :  { %v444_v26 = vadd.f32 %v443_v4, %v414_v12  ;;  %v653_v24 = vadd.f32 %v652_v28, %v611_v8 }
 0x317   :  { %v471_v18 = vadd.f32 %v470_v5, %v444_v26  ;;  %v1295_v5 = vld [vmem:[%s1294_s0] sm:$0x1] }
 0x318   :  { %v767_v25 = vpop.f32.mrf.mxu1 }
 0x31a   :  { %v503_v13 = vpop.f32.mrf.mxu2 }
 0x31b   :  { %v504_v19 = vadd.f32 %v503_v13, %v471_v18  ;;  %v709_v22 = vpop.f32.mrf.mxu3 }
 0x31c   :  { %v742_v16 = vpop.f32.mrf.mxu0 }
 0x31d   :  { %v529_v15 = vadd.f32 %v528_v11, %v504_v19 }
 0x31f   :  { %v2842_v23 = vadd.f32 %v529_v15, %v339_v14 }
 0x320   :  { %v948_v39 = vpop.f32.mrf.mxu1 }
 0x321   :  { %552 = vrot.lane.b32.xlu2 %v2842_v23, %s2489_s23  ;;  %v2287_v20 = vmul.f32 -1.442695, %v2842_v23 }
 0x322   :  { %v682_v27 = vpop.f32.mrf.mxu2 }
 0x323   :  { %v683_v29 = vadd.f32 %v682_v27, %v653_v24  ;;  %v891_v31 = vpop.f32.mrf.mxu3  ;;  %2319 = vpow2.f32 %v2287_v20  ;;  %v1534_v24 = vld [vmem:[%s1533_s13] sm:$0x1] }
 0x324   :  { %v921_v33 = vpop.f32.mrf.mxu0 }
 0x325   :  { %v710_v30 = vadd.f32 %v709_v22, %v683_v29 }
 0x327   :  { %v743_v32 = vadd.f32 %v742_v16, %v710_v30 }
 0x328   :  { %v1130_v48 = vpop.f32.mrf.mxu1 }
 0x329   :  { %v768_v35 = vadd.f32 %v767_v25, %v743_v32  ;;  %v2320_v26 = vpop.eup %2319 }
 0x32a   :  { %v850_v36 = vpop.f32.mrf.mxu2  ;;  %v535_v22 = vadd.f32 1.0, %v2320_v26 }
 0x32b   :  { %v892_v37 = vadd.f32 %v891_v31, %v850_v36  ;;  %v2846_v38 = vadd.f32 %v768_v35, %v578_v34  ;;  %v1006_v41 = vpop.f32.mrf.mxu3 }
 0x32c   :  { %v1089_v43 = vpop.f32.mrf.mxu0  ;;  %2321 = vrcp.f32 %v535_v22  ;;  %vm541_vm7 = vweird.f32 %v535_v22 }
 0x32d   :  { %v922_v40 = vadd.f32 %v921_v33, %v892_v37  ;;  %791 = vrot.lane.b32.xlu0 %v2846_v38, %s2489_s23  ;;  %v1131_v50 = vadd.f32 %v1130_v48, %v1089_v43 }
 0x32f   :  { %v949_v42 = vadd.f32 %v948_v39, %v922_v40 }
 0x330   :  { %v1245_v57 = vpop.f32.mrf.mxu1 }
 0x332   :  { %v981_v44 = vpop.f32.mrf.mxu2  ;;  %v2322_v33 = vpop.eup %2321 }
 0x333   :  { %v982_v45 = vadd.f32 %v981_v44, %v949_v42  ;;  %v1187_v51 = vpop.f32.mrf.mxu3  ;;  %v537_v36 = vmul.f32 %v2322_v33, %v535_v22  ;;  %v1773_v42 = vld [vmem:[%s1772_s15] sm:$0x1]  ;;  %vm542_vm6 = vweird.f32 %v2322_v33 }
 0x334   :  { %vm543_vm8 = vmor %vm541_vm7, %vm542_vm6 }
 0x335   :  { %v1007_v47 = vadd.f32 %v1006_v41, %v982_v45  ;;  %v1220_v54 = vpop.f32.mrf.mxu0  ;;  %v538_v43 = vsub.f32 1.0, %v537_v36 }
 0x337   :  { %v2850_v49 = vadd.f32 %v1007_v47, %v817_v46  ;;  %v2289_v46 = vmul.f32 -1.442695, %v2846_v38  ;;  %v539_v47 = vmul.f32 %v2322_v33, %v538_v43 }
 0x339   :  { %1030 = vrot.lane.b32.xlu1 %v2850_v49, %s2489_s23  ;;  %2323 = vpow2.f32 %v2289_v46 }
 0x33a   :  { %v1160_v52 = vpop.f32.mrf.mxu2  ;;  %v1426_v2 = vpop.f32.mrf.mxu1 }
 0x33b   :  { %v1161_v53 = vadd.f32 %v1160_v52, %v1131_v50  ;;  %v540_v50 = vadd.f32 %v2322_v33, %v539_v47  ;;  %v545_v52 = vand.u32 2147483647, %v535_v22 }
 0x33c   :  { %v1369_v61 = vpop.f32.mrf.mxu3 }
 0x33d   :  { %v1188_v55 = vadd.f32 %v1187_v51, %v1161_v53  ;;  %v547_v51 = vand.u32 2147483648, %v535_v22  ;;  %v544_v53 = vsel %vm543_vm8, %v2322_v33, %v540_v50  ;;  %vm546_vm9 = vcmp.eq.f32.partialorder %v545_v52, 8.507059e+37 }
 0x33f   :  { %v1221_v56 = vadd.f32 %v1220_v54, %v1188_v55  ;;  %v1399_v0 = vpop.f32.mrf.mxu0  ;;  %v548_v54 = vor.u32 1.1754944e-38, %v547_v51  ;;  %v2324_v55 = vpop.eup %2323 }
 0x341   :  { %v1246_v59 = vadd.f32 %v1245_v57, %v1221_v56  ;;  %v2873_v56 = vsel %vm546_vm9, %v548_v54, %v544_v53 }
 0x343   :  { %v2854_v60 = vadd.f32 %v1246_v59, %v1056_v58 }
 0x344   :  { %v1328_v62 = vpop.f32.mrf.mxu2  ;;  %v1608_v12 = vpop.f32.mrf.mxu1 }
 0x345   :  { %v1370_v63 = vadd.f32 %v1369_v61, %v1328_v62  ;;  %1269 = vrot.lane.b32.xlu2 %v2854_v60, %s2489_s23  ;;  %v2293_v48 = vmul.f32 -1.442695, %v2854_v60  ;;  %v774_v61 = vadd.f32 1.0, %v2324_v55  ;;  %v2291_v62 = vmul.f32 -1.442695, %v2850_v49 }
 0x346   :  { %v1484_v21 = vpop.f32.mrf.mxu3 }
 0x347   :  { %v1400_v1 = vadd.f32 %v1399_v0, %v1370_v63  ;;  %2325 = vpow2.f32 %v2293_v48  ;;  %vm780_vm12 = vweird.f32 %v774_v61  ;;  %v784_v22 = vand.u32 2147483647, %v774_v61 }
 0x348   :  { %2327 = vrcp.f32 %v774_v61 }
 0x349   :  { %v1427_v6 = vadd.f32 %v1426_v2, %v1400_v1  ;;  %v1567_v4 = vpop.f32.mrf.mxu0  ;;  %2329 = vpow2.f32 %v2291_v62  ;;  %vm785_vm2 = vcmp.eq.f32.partialorder %v784_v22, 8.507059e+37 }
 0x34a   :  { %v1609_v8 = vadd.f32 %v1608_v12, %v1567_v4 }
 0x34d   :  { %v2326_v58 = vpop.eup %2325 }
 0x34e   :  { %v1459_v9 = vpop.f32.mrf.mxu2  ;;  %v1723_v16 = vpop.f32.mrf.mxu1  ;;  %v1252_v63 = vadd.f32 1.0, %v2326_v58 }
 0x34f   :  { %v1460_v3 = vadd.f32 %v1459_v9, %v1427_v6  ;;  %v2328_v0 = vpop.eup %2327 }
 0x350   :  { %v1665_v28 = vpop.f32.mrf.mxu3  ;;  %2331 = vrcp.f32 %v1252_v63  ;;  %v2330_v1 = vpop.eup %2329  ;;  %v776_v20 = vmul.f32 %v2328_v0, %v774_v61  ;;  %vm781_vm10 = vweird.f32 %v2328_v0  ;;  %vm1258_vm14 = vweird.f32 %v1252_v63 }
 0x351   :  { %v1485_v10 = vadd.f32 %v1484_v21, %v1460_v3  ;;  %v1013_v6 = vadd.f32 1.0, %v2330_v1  ;;  %vm2879_vm13 = vmor %vm780_vm12, %vm781_vm10 }
 0x352   :  { %v777_v9 = vsub.f32 1.0, %v776_v20 }
 0x353   :  { %v2859_v11 = vadd.f32 %v1485_v10, %v1295_v5  ;;  %v1698_v19 = vpop.f32.mrf.mxu0  ;;  %2333 = vrcp.f32 %v1013_v6  ;;  %vm1019_vm5 = vweird.f32 %v1013_v6 }
 0x354   :  { %v778_v4 = vmul.f32 %v2328_v0, %v777_v9 }
 0x355   :  { %1508 = vrot.lane.b32.xlu0 %v2859_v11, %s2489_s23 }
 0x356   :  { %v2332_v2 = vpop.eup %2331  ;;  %v779_v12 = vadd.f32 %v2328_v0, %v778_v4 }
 0x357   :  { %v1254_v21 = vmul.f32 %v2332_v2, %v1252_v63  ;;  %vm1259_vm11 = vweird.f32 %v2332_v2 }
 0x358   :  { %v1638_v18 = vpop.f32.mrf.mxu2  ;;  %v1904_v35 = vpop.f32.mrf.mxu1  ;;  %vm1260_vm15 = vmor %vm1258_vm14, %vm1259_vm11 }
 0x359   :  { %v1639_v13 = vadd.f32 %v1638_v18, %v1609_v8  ;;  %v1255_v3 = vsub.f32 1.0, %v1254_v21  ;;  %v2334_v10 = vpop.eup %2333  ;;  %v1264_v18 = vand.u32 2147483648, %v1252_v63 }
 0x35a   :  { %v1847_v29 = vpop.f32.mrf.mxu3  ;;  %v1015_v26 = vmul.f32 %v2334_v10, %v1013_v6  ;;  %vm1020_vm4 = vweird.f32 %v2334_v10 }
 0x35b   :  { %v1666_v14 = vadd.f32 %v1665_v28, %v1639_v13  ;;  %v1256_v5 = vmul.f32 %v2332_v2, %v1255_v3  ;;  %v786_v28 = vand.u32 2147483648, %v774_v61  ;;  %v2295_v13 = vmul.f32 -1.442695, %v2859_v11  ;;  %vm1021_vm6 = vmor %vm1019_vm5, %vm1020_vm4 }
 0x35c   :  { %v1877_v32 = vpop.f32.mrf.mxu0 }
 0x35d   :  { %v1699_v15 = vadd.f32 %v1698_v19, %v1666_v14  ;;  %v1257_v8 = vadd.f32 %v2332_v2, %v1256_v5  ;;  %v1262_v14 = vand.u32 2147483647, %v1252_v63  ;;  %2335 = vpow2.f32 %v2295_v13 }
 0x35f   :  { %v1724_v25 = vadd.f32 %v1723_v16, %v1699_v15  ;;  %v783_v15 = vsel %vm2879_vm13, %v2328_v0, %v779_v12  ;;  %v1261_v16 = vsel %vm1260_vm15, %v2332_v2, %v1257_v8  ;;  %vm1263_vm3 = vcmp.eq.f32.partialorder %v1262_v14, 8.507059e+37 }
 0x361   :  { %v2863_v27 = vadd.f32 %v1724_v25, %v1534_v24  ;;  %v1016_v24 = vsub.f32 1.0, %v1015_v26  ;;  %v787_v25 = vor.u32 1.1754944e-38, %v786_v28 }
 0x362   :  { %v1806_v30 = vpop.f32.mrf.mxu2 }
 0x363   :  { %v1848_v31 = vadd.f32 %v1847_v29, %v1806_v30  ;;  %1747 = vrot.lane.b32.xlu1 %v2863_v27, %s2489_s23  ;;  %v1962_v41 = vpop.f32.mrf.mxu3  ;;  %v1265_v29 = vor.u32 1.1754944e-38, %v1264_v18  ;;  %v2297_v46 = vmul.f32 -1.442695, %v2863_v27 }
 0x365   :  { %v1878_v34 = vadd.f32 %v1877_v32, %v1848_v31  ;;  %v2886_v32 = vsel %vm785_vm2, %v787_v25, %v783_v15  ;;  %v2888_v33 = vsel %vm1263_vm3, %v1265_v29, %v1261_v16 }
 0x367   :  { %v1905_v37 = vadd.f32 %v1904_v35, %v1878_v34 }
 0x36a   :  { %v1937_v39 = vpop.f32.mrf.mxu2 }
 0x36b   :  { %v1938_v40 = vadd.f32 %v1937_v39, %v1905_v37  ;;  %v1017_v37 = vmul.f32 %v2334_v10, %v1016_v24  ;;  %v2336_v39 = vpop.eup %2335 }
 0x36c   :  { %v1491_v43 = vadd.f32 1.0, %v2336_v39 }
 0x36d   :  { %v1963_v44 = vadd.f32 %v1962_v41, %v1938_v40  ;;  %v1018_v40 = vadd.f32 %v2334_v10, %v1017_v37  ;;  %v1025_v41 = vand.u32 2147483648, %v1013_v6 }
 0x36e   :  { %v1503_v20 = vand.u32 2147483648, %v1491_v43  ;;  %vm1497_vm9 = vweird.f32 %v1491_v43  ;;  %v1501_v21 = vand.u32 2147483647, %v1491_v43 }
 0x36f   :  { %v2867_v45 = vadd.f32 %v1963_v44, %v1773_v42  ;;  %v1023_v42 = vand.u32 2147483647, %v1013_v6  ;;  %v1022_v47 = vsel %vm1021_vm6, %v2334_v10, %v1018_v40  ;;  %v1026_v48 = vor.u32 1.1754944e-38, %v1025_v41 }
 0x370   :  { %v1504_v5 = vor.u32 1.1754944e-38, %v1503_v20  ;;  %vm1502_vm12 = vcmp.eq.f32.partialorder %v1501_v21, 8.507059e+37  ;;  %vm2030_vm6 = vcmask 1040384  }
 0x371   :  { %1986 = vrot.lane.b32.xlu2 %v2867_v45, %s2489_s23  ;;  %v2299_v30 = vmul.f32 -1.442695, %v2867_v45  ;;  %vm1024_vm7 = vcmp.eq.f32.partialorder %v1023_v42, 8.507059e+37 }
 0x372   :  { %v2895_v52 = vsel %vm1024_vm7, %v1026_v48, %v1022_v47  ;;  %vm2032_vm7 = vcmask 1041408  }
 0x373   :  { %2337 = vpow2.f32 %v2299_v30  ;;  %v1046_v21 = vmul.f32 %v2895_v52, %v2662_v7 }
 0x374   :  { %2339 = vrcp.f32 %v1491_v43 }
 0x375   :  { %2341 = vpow2.f32 %v2297_v46 }
 0x379   :  { %v2338_v44 = vpop.eup %2337 }
 0x37a   :  { %v1969_v50 = vadd.f32 1.0, %v2338_v44  ;;  %v2340_v54 = vpop.eup %2339 }
 0x37b   :  { %v553_v57 = vpop.permute.xlu2 %552  ;;  %v2342_v55 = vpop.eup %2341  ;;  %vm1498_vm8 = vweird.f32 %v2340_v54 }
 0x37c   :  { %v555_v59 = vmul.f32 %v553_v57, %v2873_v56  ;;  %2343 = vrcp.f32 %v1969_v50  ;;  %v1493_v57 = vmul.f32 %v2340_v54, %v1491_v43  ;;  %vm1499_vm10 = vmor %vm1497_vm9, %vm1498_vm8  ;;  %v1981_v10 = vand.u32 2147483648, %v1969_v50 }
 0x37d   :  { %vm1975_vm13 = vweird.f32 %v1969_v50  ;;  %v1979_v12 = vand.u32 2147483647, %v1969_v50  ;;  %vm2034_vm8 = vcmask 1042432   ;;  %vm2036_vm9 = vcmask 1043456  }
 0x37e   :  { %557 = vrot.lane.b32.xlu0 %v555_v59, %s2490_s24  ;;  %v1730_v59 = vadd.f32 1.0, %v2342_v55  ;;  %v1494_v61 = vsub.f32 1.0, %v1493_v57  ;;  %v1982_v19 = vor.u32 1.1754944e-38, %v1981_v10 }
 0x37f   :  { %vm1980_vm15 = vcmp.eq.f32.partialorder %v1979_v12, 8.507059e+37 }
 0x380   :  { %2345 = vrcp.f32 %v1730_v59  ;;  %v1495_v63 = vmul.f32 %v2340_v54, %v1494_v61  ;;  %v1742_v25 = vand.u32 2147483648, %v1730_v59  ;;  %vm1736_vm3 = vweird.f32 %v1730_v59 }
 0x381   :  { %v1740_v29 = vand.u32 2147483647, %v1730_v59 }
 0x382   :  { %v2344_v58 = vpop.eup %2343  ;;  %v1496_v2 = vadd.f32 %v2340_v54, %v1495_v63 }
 0x383   :  { %v1971_v62 = vmul.f32 %v2344_v58, %v1969_v50  ;;  %vm1976_vm11 = vweird.f32 %v2344_v58  ;;  %vm1741_vm5 = vcmp.eq.f32.partialorder %v1740_v29, 8.507059e+37 }
 0x384   :  { %v1500_v3 = vsel %vm1499_vm10, %v2340_v54, %v1496_v2  ;;  %vm1977_vm14 = vmor %vm1975_vm13, %vm1976_vm11  ;;  %vm2038_vm10 = vcmask 1044480   ;;  %vm2040_vm11 = vcmask 1045504  }
 0x385   :  { %v1972_v0 = vsub.f32 1.0, %v1971_v62  ;;  %v2899_v28 = vsel %vm1502_vm12, %v1504_v5, %v1500_v3  ;;  %v801_v62 = vsub.f32 1.0, %v2886_v32  ;;  %vm2042_vm12 = vcmask 1046528  }
 0x386   :  { %v2346_v1 = vpop.eup %2345 }
 0x387   :  { %v1973_v6 = vmul.f32 %v2344_v58, %v1972_v0  ;;  %v1732_v9 = vmul.f32 %v2346_v1, %v1730_v59  ;;  %vm1737_vm2 = vweird.f32 %v2346_v1 }
 0x388   :  { %vm1738_vm4 = vmor %vm1736_vm3, %vm1737_vm2 }
 0x389   :  { %v1974_v4 = vadd.f32 %v2344_v58, %v1973_v6  ;;  %v1733_v8 = vsub.f32 1.0, %v1732_v9  ;;  %v807_v6 = vmul.f32 %v2886_v32, %v2662_v7 }
 0x38b   :  { %v1978_v13 = vsel %vm1977_vm14, %v2344_v58, %v1974_v4  ;;  %v1734_v22 = vmul.f32 %v2346_v1, %v1733_v8  ;;  %v1279_v4 = vsub.f32 1.0, %v2888_v33  ;;  %v1285_v8 = vmul.f32 %v2888_v33, %v2662_v7 }
 0x38c   :  { %v2903_v14 = vsel %vm1980_vm15, %v1982_v19, %v1978_v13 }
 0x38d   :  { %v1735_v24 = vadd.f32 %v2346_v1, %v1734_v22 }
 0x38f   :  { %v1739_v30 = vsel %vm1738_vm4, %v2346_v1, %v1735_v24 }
 0x39f   :  { %v792_v31 = vpop.permute.xlu0 %791  ;;  %v1270_v34 = vpop.permute.xlu2 %1269 }
 0x3a0   :  { %v794_v35 = vmul.f32 %v792_v31, %v2886_v32  ;;  %v1272_v36 = vmul.f32 %v1270_v34, %v2888_v33  ;;  %v1743_v31 = vor.u32 1.1754944e-38, %v1742_v25 }
 0x3a2   :  { %796 = vrot.lane.b32.xlu1 %v794_v35, %s2490_s24  ;;  %1274 = vrot.lane.b32.xlu0 %v1272_v36, %s2490_s24  ;;  %v2907_v35 = vsel %vm1741_vm5, %v1743_v31, %v1739_v30 }
 0x3ab   :  { %v1031_v51 = vpop.permute.xlu1 %1030 }
 0x3ac   :  { %v1033_v53 = vmul.f32 %v1031_v51, %v2895_v52 }
 0x3ae   :  { %1035 = vrot.lane.b32.xlu2 %v1033_v53, %s2490_s24 }
 0x3c7   :  { %v1509_v26 = vpop.permute.xlu0 %1508 }
 0x3c8   :  { %v1511_v18 = vmul.f32 %v1509_v26, %v2899_v28 }
 0x3ca   :  { %1513 = vrot.lane.b32.xlu1 %v1511_v18, %s2490_s24 }
 0x3cb   :  { %v1987_v15 = vpop.permute.xlu2 %1986 }
 0x3cc   :  { %v1989_v16 = vmul.f32 %v1987_v15, %v2903_v14  ;;  %v93_v15 = vld [vmem:[#allocation9 + $0x18] sm:$0xff] }
 0x3cd   :  { %v2938_v24 = vand.u32 4294901760, %v93_v15 }
 0x3ce   :  { %1991 = vrot.lane.b32.xlu0 %v1989_v16, %s2490_s24  ;;  %v92_v16 = vld [vmem:[#allocation9 + $0x10] sm:$0xff] }
 0x3cf   :  { %v2940_v25 = vand.u32 4294901760, %v92_v16  ;;  %v2094_v33 = vsub.f32 %v93_v15, %v2938_v24  ;;  %2165 = vmatpush.msra.mxu3 %v2938_v24  ;;  %2065 = vmatpush.msra.mxu0 %v2938_v24 }
 0x3d1   :  { %v2100_v29 = vsub.f32 %v92_v16, %v2940_v25  ;;  %v2095_v30 = vand.u32 4294901760, %v2094_v33  ;;  %2136 = vmatpush.msra.mxu2 %v2094_v33  ;;  %2167 = vmatpush.msra.mxu3 %v2940_v25 }
 0x3d2   :  { %2067 = vmatpush.msra.mxu0 %v2940_v25 }
 0x3d3   :  { %v2101_v31 = vand.u32 4294901760, %v2100_v29  ;;  %2139 = vmatpush.msra.mxu2 %v2100_v29 }
 0x3d5   :  { %v1748_v34 = vpop.permute.xlu1 %1747 }
 0x3d6   :  { %v1750_v36 = vmul.f32 %v1748_v34, %v2907_v35 }
 0x3d8   :  { %1752 = vrot.lane.b32.xlu2 %v1750_v36, %s2490_s24  ;;  %v1518_v36 = vsub.f32 1.0, %v2899_v28 }
 0x3f0   :  { %v558_v37 = vpop.permute.xlu0 %557 }
 0x3f1   :  { %v560_v39 = vadd.f32 %v558_v37, %v2842_v23 }
 0x3f3   :  { %2347 = vtanh.f32 %v560_v39  ;;  %v2096_v39 = vsub.f32 %v2094_v33, %v2095_v30 }
 0x3f9   :  { %v2348_v40 = vpop.eup %2347 }
 0x3fa   :  { %564 = vrot.lane.b32.xlu1 %v2348_v40, %s2491_s25  ;;  %v2102_v40 = vsub.f32 %v2100_v29, %v2101_v31 }
 0x408   :  { %v1036_v41 = vpop.permute.xlu2 %1035 }
 0x409   :  { %v1038_v42 = vadd.f32 %v1036_v41, %v2850_v49  ;;  %v1757_v41 = vsub.f32 1.0, %v2907_v35 }
 0x40b   :  { %2349 = vtanh.f32 %v1038_v42 }
 0x411   :  { %v2350_v43 = vpop.eup %2349 }
 0x412   :  { %1042 = vrot.lane.b32.xlu0 %v2350_v43, %s2491_s25  ;;  %v2097_v43 = vand.u32 4294901760, %v2096_v39 }
 0x414   :  { %v797_v44 = vpop.permute.xlu1 %796  ;;  %v1275_v46 = vpop.permute.xlu0 %1274  ;;  %2098 = vmatpush.msra.mxu1 %v2097_v43 }
 0x415   :  { %v799_v47 = vadd.f32 %v797_v44, %v2846_v38  ;;  %v1277_v48 = vadd.f32 %v1275_v46, %v2854_v60  ;;  %v2103_v44 = vand.u32 4294901760, %v2102_v40 }
 0x417   :  { %2351 = vtanh.f32 %v799_v47  ;;  %v1524_v47 = vmul.f32 %v2899_v28, %v2662_v7  ;;  %2104 = vmatpush.msra.mxu1 %v2103_v44 }
 0x418   :  { %2353 = vtanh.f32 %v1277_v48  ;;  %v1763_v48 = vmul.f32 %v2907_v35, %v2662_v7 }
 0x41d   :  { %v2352_v23 = vpop.eup %2351 }
 0x41e   :  { %v2354_v50 = vpop.eup %2353  ;;  %803 = vrot.lane.b32.xlu2 %v2352_v23, %s2491_s25 }
 0x41f   :  { %1281 = vrot.lane.b32.xlu1 %v2354_v50, %s2491_s25 }
 0x432   :  { %v1753_v51 = vpop.permute.xlu2 %1752 }
 0x433   :  { %v1755_v49 = vadd.f32 %v1753_v51, %v2863_v27  ;;  %v562_v27 = vsub.f32 1.0, %v2873_v56  ;;  %v1996_v51 = vsub.f32 1.0, %v2903_v14 }
 0x435   :  { %2355 = vtanh.f32 %v1755_v49 }
 0x43b   :  { %v2356_v53 = vpop.eup %2355 }
 0x43c   :  { %1759 = vrot.lane.b32.xlu0 %v2356_v53, %s2491_s25  ;;  %v1514_v54 = vpop.permute.xlu1 %1513 }
 0x43d   :  { %v1516_v38 = vadd.f32 %v1514_v54, %v2859_v11  ;;  %v1040_v11 = vsub.f32 1.0, %v2895_v52  ;;  %v2002_v54 = vmul.f32 %v2903_v14, %v2662_v7 }
 0x43f   :  { %2357 = vtanh.f32 %v1516_v38 }
 0x440   :  { %v1992_v60 = vpop.permute.xlu0 %1991 }
 0x441   :  { %v1994_v55 = vadd.f32 %v1992_v60, %v2867_v45  ;;  %v568_v45 = vmul.f32 %v2873_v56, %v2662_v7 }
 0x443   :  { %2359 = vtanh.f32 %v1994_v55 }
 0x445   :  { %v2358_v57 = vpop.eup %2357 }
 0x446   :  { %1520 = vrot.lane.b32.xlu2 %v2358_v57, %s2491_s25 }
 0x449   :  { %v2360_v58 = vpop.eup %2359 }
 0x44a   :  { %1998 = vrot.lane.b32.xlu1 %v2360_v58, %s2491_s25 }
 0x46c   :  { %v565_v59 = vpop.permute.xlu1 %564 }
 0x46d   :  { %v567_v0 = vmul.f32 %v565_v59, %v562_v27  ;;  %v91_v59 = vld [vmem:[#allocation9 + $0x8] sm:$0xff] }
 0x46e   :  { %v2068_v27 = vand.u32 4294901760, %v91_v59 }
 0x46f   :  { %v569_v20 = vadd.f32 %v568_v45, %v567_v0 }
 0x470   :  { %2169 = vmatpush.msra.mxu3 %v2068_v27  ;;  %2069 = vmatpush.msra.mxu0 %v2068_v27 }
 0x471   :  { %v2010_v5 = vperm.slane %v569_v20, 0 }
 0x473   :  { %v2031_v18 = vsel %vm2030_vm6, %v2662_v7, %v2010_v5 }
 0x478   :  { %v804_v61 = vpop.permute.xlu2 %803 }
 0x479   :  { %v806_v1 = vmul.f32 %v804_v61, %v801_v62  ;;  %v90_v61 = vld [vmem:[#allocation9] sm:$0xff]  ;;  %v2106_v62 = vsub.f32 %v91_v59, %v2068_v27 }
 0x47a   :  { %v2070_v7 = vand.u32 4294901760, %v90_v61 }
 0x47b   :  { %v808_v9 = vadd.f32 %v807_v6, %v806_v1  ;;  %v2107_v14 = vand.u32 4294901760, %v2106_v62  ;;  %2142 = vmatpush.msra.mxu2 %v2106_v62 }
 0x47c   :  { %2171 = vmatpush.msra.mxu3 %v2070_v7  ;;  %2071 = vmatpush.msra.mxu0 %v2070_v7 }
 0x47d   :  { %v2013_v12 = vperm.slane %v808_v9, 0  ;;  %v2108_v0 = vsub.f32 %v2106_v62, %v2107_v14 }
 0x47e   :  { %2194 = vmatpush.msrb.mxu0 %v2095_v30 }
 0x47f   :  { %v2033_v52 = vsel %vm2032_vm7, %v2031_v18, %v2013_v12  ;;  %v2109_v1 = vand.u32 4294901760, %v2108_v0 }
 0x480   :  { %2198 = vmatpush.msrb.mxu0 %v2101_v31 }
 0x481   :  { %2110 = vmatpush.msra.mxu1 %v2109_v1 }
 0x482   :  { %2202 = vmatpush.msrb.mxu0 %v2107_v14 }
 0x484   :  { %v1043_v63 = vpop.permute.xlu0 %1042 }
 0x485   :  { %v1045_v2 = vmul.f32 %v1043_v63, %v1040_v11  ;;  %v2112_v63 = vsub.f32 %v90_v61, %v2070_v7 }
 0x487   :  { %v1047_v3 = vadd.f32 %v1046_v21, %v1045_v2  ;;  %v2113_v11 = vand.u32 4294901760, %v2112_v63  ;;  %2145 = vmatpush.msra.mxu2 %v2112_v63 }
 0x489   :  { %v2016_v26 = vperm.slane %v1047_v3, 0  ;;  %v2114_v45 = vsub.f32 %v2112_v63, %v2113_v11  ;;  %2206 = vmatpush.msrb.mxu0 %v2113_v11 }
 0x48b   :  { %v2035_v19 = vsel %vm2034_vm8, %v2033_v52, %v2016_v26 }
 0x491   :  { %v1282_v10 = vpop.permute.xlu1 %1281 }
 0x492   :  { %v1284_v56 = vmul.f32 %v1282_v10, %v1279_v4  ;;  %v2312_v10 = vld [vmem:[%s2978_s5] ss:$0 sm:$0xff] }
 0x494   :  { %v1286_v32 = vadd.f32 %v1285_v8, %v1284_v56 }
 0x496   :  { %v2019_v13 = vperm.slane %v1286_v32, 0 }
 0x498   :  { %v2037_v22 = vsel %vm2036_vm9, %v2035_v19, %v2019_v13 }
 0x4a0   :  { %v1521_v34 = vpop.permute.xlu2 %1520 }
 0x4a1   :  { %v1523_v42 = vmul.f32 %v1521_v34, %v1518_v36 }
 0x4a3   :  { %v1525_v23 = vadd.f32 %v1524_v47, %v1523_v42 }
 0x4a5   :  { %v2022_v53 = vperm.slane %v1525_v23, 0 }
 0x4a7   :  { %v2039_v57 = vsel %vm2038_vm10, %v2037_v22, %v2022_v53 }
 0x4ae   :  { %v1760_v37 = vpop.permute.xlu0 %1759 }
 0x4af   :  { %v1762_v46 = vmul.f32 %v1760_v37, %v1757_v41 }
 0x4b1   :  { %v1764_v50 = vadd.f32 %v1763_v48, %v1762_v46 }
 0x4b3   :  { %v2025_v60 = vperm.slane %v1764_v50, 0 }
 0x4b5   :  { %v2041_v58 = vsel %vm2040_vm11, %v2039_v57, %v2025_v60 }
 0x4bc   :  { %v1999_v49 = vpop.permute.xlu1 %1998 }
 0x4bd   :  { %v2001_v38 = vmul.f32 %v1999_v49, %v1996_v51 }
 0x4bf   :  { %v2003_v55 = vadd.f32 %v2002_v54, %v2001_v38 }
 0x4c1   :  { %v2028_v28 = vperm.slane %v2003_v55, 0 }
 0x4c3   :  { %v2043_v35 = vsel %vm2042_vm12, %v2041_v58, %v2028_v28 }
 0x4c4   :  { %2048 = vrot.lane.b32.xlu2 %v2043_v35, %s2491_s25 }
 0x4cc   :  { %2250 = vrot.lane.b32.xlu2 %v2665_v17, %s2491_s25  ;;  %v2115_v17 = vand.u32 4294901760, %v2114_v45 }
 0x4ce   :  { %2116 = vmatpush.msra.mxu1 %v2115_v17 }
 0x4d0   :  { %2225 = vmatpush.msrb.mxu1 %v2938_v24 }
 0x4d2   :  { %2227 = vmatpush.msrb.mxu1 %v2940_v25 }
 0x4d4   :  { %2229 = vmatpush.msrb.mxu1 %v2068_v27 }
 0x4d6   :  { %2231 = vmatpush.msrb.mxu1 %v2070_v7 }
 0x51e   :  { %v2049_v2 = vpop.permute.xlu2 %2048 }
 0x51f   :  { %v2050_v6 = vsel %vm100_vm1, %v2049_v2, 0 }
 0x520   :  { %v2072_v20 = vand.u32 4294901760, %v2050_v6 }
 0x522   :  { %v2073_v21 = vsub.f32 %v2050_v6, %v2072_v20  ;;  %2118 = vmatmul.f32.vlgmr.msra.gmra.mxu1 %v2072_v20 }
 0x524   :  { %v2074_v9 = vand.u32 4294901760, %v2073_v21  ;;  %2148 = vmatmul.f32.vlgmr.msra.gmra.mxu2 %v2073_v21 }
 0x526   :  { %v2075_v3 = vsub.f32 %v2073_v21, %v2074_v9  ;;  %2175 = vmatmul.f32.vlgmr.msra.gmra.mxu3 %v2074_v9  ;;  %v2251_v4 = vpop.permute.xlu2 %2250 }
 0x527   :  { %2254 = vst.msk [vmem:[#allocation10] sm:$0x1] %vm84_vm0, %v2251_v4 }
 0x528   :  { %v2076_v5 = vand.u32 4294901760, %v2075_v3  ;;  %2267 = dma.vmem_to_hbm [thread:$0]  %s2263_s18, 16, %s2265_s20, [#allocation6]  }
 0x52a   :  { %2077 = vmatmul.f32.vlgmr.msra.gmra.mxu0 %v2076_v5  ;;  %2233 = vmatmul.f32.vlgmr.msrb.gmra.mxu1 %v2072_v20 }
 0x532   :  { %2208 = vmatmul.f32.vlgmr.msrb.gmra.mxu0 %v2072_v20 }
 0x59f   :  { %v2119_v12 = vpop.f32.mrf.mxu1 }
 0x5a7   :  { %v2078_v8 = vpop.f32.mrf.mxu0  ;;  %v2149_v32 = vpop.f32.mrf.mxu2 }
 0x5a8   :  { %v2079_v56 = vadd.f32 %v2312_v10, %v2078_v8  ;;  %v2234_v15 = vpop.f32.mrf.mxu1 }
 0x5a9   :  { %v2176_v52 = vpop.f32.mrf.mxu3 }
 0x5aa   :  { %v2120_v26 = vadd.f32 %v2119_v12, %v2079_v56 }
 0x5ac   :  { %v2150_v18 = vadd.f32 %v2149_v32, %v2120_v26 }
 0x5ae   :  { %v2177_v13 = vadd.f32 %v2176_v52, %v2150_v18 }
 0x5af   :  { %v2209_v19 = vpop.f32.mrf.mxu0 }
 0x5b0   :  { %v2210_v22 = vadd.f32 %v2209_v19, %v2177_v13 }
 0x5b2   :  { %v2235_v16 = vadd.f32 %v2234_v15, %v2210_v22 }
 0x5b4   :  { %2237 = vmax.xlane.f32.xlu0 %v2235_v16 }
 0x627   :  { %v2238_v24 = vpop.xlane.xlu0 %2237 }
 0x628   :  { %v2239_v25 = vsub.f32 %v2235_v16, %v2238_v24 }
 0x62a   :  { %v2240_v33 = vmul.f32 1.442695, %v2239_v25 }
 0x62c   :  { %2361 = vpow2.f32 %v2240_v33 }
 0x632   :  { %v2362_v29 = vpop.eup %2361 }
 0x633   :  { %2242 = vadd.xlane.f32.xlu1 %v2362_v29 }
 0x6a6   :  { %v2243_v30 = vpop.xlane.xlu1 %2242 }
 0x6a7   :  { %2363 = vlog2.f32 %v2243_v30 }
 0x6ad   :  { %v2364_v31 = vpop.eup %2363 }
 0x6ae   :  { %v2245_v34 = vmul.f32 0.6931472, %v2364_v31 }
 0x6b0   :  { %v2246_v36 = vsub.f32 %v2239_v25, %v2245_v34 }
 0x6b2   :  { %2247 = vst [vmem:[%s2979_s6] sm:$0xff] %v2246_v36 }
 0x6b3   :  { %2479 = dma.done.wait [#allocation6], 16  }
 0x6b4   :  { %2480 = vsyncadd [#allocation6], 4294967280 }
 0x6b5   :  { %2274 = vsyncpa [#allocation5], 1 }
 0x6b6   :  { %2275 = vsyncpa [#allocation8], 1 }
 0x6b7   :  { %2276 = vsyncpa [#allocation6], 1 }

</bundles_post_ra>
